<compile_context>
chip_gen: v7x
topology: tpu7x:2x2x1
jax: 0.10.0
libtpu: 0.0.40
codegen_flags: <defaults>
</compile_context>

<pallas_src>
import functools

import jax
import jax.numpy as jnp
from jax.experimental import pallas as pl
from jax.experimental.pallas import tpu as pltpu


def _eps_insensitive_kernel(p1_ref, p2_ref, r1_ref, r2_ref, o_ref, *, epsilon):
    # Refs are VMEM tiles (2-D (BR, C) or 1-D (BB,)). Pure VPU elementwise work.
    logits = (p1_ref[...] - p2_ref[...]) - (r1_ref[...] - r2_ref[...])
    o_ref[...] = jnp.maximum(jnp.abs(logits) - epsilon, 0.0).astype(o_ref.dtype)


# Lane widths tried (largest first) so the batch reshapes copy-free.
_LANE_CANDIDATES = (2048, 1024, 512, 256, 128)
# ~2 MiB per operand per grid step: mem-bound sweet spot on v5e/v6e/v7x.
_TARGET_BLOCK_BYTES = 2 * 1024 * 1024
# 5 operands x 2 double-buffers x 2 MiB = 20 MiB; leave margin under this.
_VMEM_LIMIT_BYTES = 32 * 1024 * 1024
# Below this much total HBM traffic, plain fused XLA is as fast or faster.
_SMALL_FAST_PATH_BYTES = 1 * 1024 * 1024


def _pick_lane_width(b):
    for c in _LANE_CANDIDATES:
        if b % c == 0:
            return c
    return None


def _round_up(x, m):
    return ((x + m - 1) // m) * m


def _compiler_params():
    return pltpu.CompilerParams(
        dimension_semantics=("parallel",),
        vmem_limit_bytes=_VMEM_LIMIT_BYTES,
    )


def _loss_2d(inputs, b, c, dtype, epsilon):
    """Copy-free 2-D (r, c) view of the contiguous 1-D batch; lane-dense tiles."""
    r = b // c
    inputs = [x.reshape(r, c) for x in inputs]   # contiguous reshape: no copy.

    itemsize = jnp.dtype(dtype).itemsize
    # Row-block height: byte-based target, rounded to a multiple of 16 rows.
    br = max(16, (_TARGET_BLOCK_BYTES // (c * itemsize)) // 16 * 16)
    if r <= br:
        if r > 8:
            # Split into >=2 balanced row blocks so the "parallel" axis can be
            # sharded across v7x's two TensorCores (no effect on v5e/v6e).
            br = max(8, _round_up(pl.cdiv(r, 2), 8))
        else:
            br = r
    grid = (pl.cdiv(r, br),)

    spec = pl.BlockSpec((br, c), lambda i: (i, 0))
    kernel = functools.partial(_eps_insensitive_kernel, epsilon=epsilon)

    out = pl.pallas_call(
        kernel,
        out_shape=jax.ShapeDtypeStruct((r, c), dtype),
        grid=grid,
        in_specs=[spec, spec, spec, spec],
        out_specs=spec,
        compiler_params=_compiler_params(),
    )(*inputs)
    return out.reshape(b)


def _loss_1d(inputs, b, dtype, epsilon):
    """Non-multiple-of-128 batches: no pad copy, direct 1-D blocks, ragged last
    block is clipped by Pallas on write."""
    itemsize = jnp.dtype(dtype).itemsize
    target = max(1024, (_TARGET_BLOCK_BYTES // itemsize) // 1024 * 1024)
    # At least two grid steps when possible (v7x two-TensorCore sharding),
    # blocks kept lane/sublane aligned (multiple of 8*128 = 1024 elements).
    half = max(1024, _round_up(pl.cdiv(b, 2), 1024))
    block_b = min(target, half)
    grid = (pl.cdiv(b, block_b),)

    spec = pl.BlockSpec((block_b,), lambda i: (i,))
    kernel = functools.partial(_eps_insensitive_kernel, epsilon=epsilon)

    return pl.pallas_call(
        kernel,
        out_shape=jax.ShapeDtypeStruct((b,), dtype),
        grid=grid,
        in_specs=[spec, spec, spec, spec],
        out_specs=spec,
        compiler_params=_compiler_params(),
    )(*inputs)


def epsilon_insensitive_loss(policy_log1, policy_log2, ref_log1, ref_log2,
                             epsilon: float):
    """Elementwise epsilon-insensitive DPO loss.

    Args:
      policy_log1, policy_log2, ref_log1, ref_log2: float arrays of shape (B,),
        all the same dtype.
      epsilon: python float (static).

    Returns:
      array of shape (B,), same dtype as the inputs.
    """
    assert policy_log1.shape == policy_log2.shape == ref_log1.shape == ref_log2.shape
    assert policy_log1.ndim == 1
    assert (policy_log1.dtype == policy_log2.dtype == ref_log1.dtype
            == ref_log2.dtype), "all inputs must share a dtype"

    (b,) = policy_log1.shape
    dtype = policy_log1.dtype
    epsilon = float(epsilon)

    # Tiny batches: kernel dispatch dominates ~KBs of traffic; XLA's fused
    # elementwise path is as fast or faster and handles any B.
    total_bytes = 5 * b * jnp.dtype(dtype).itemsize
    if total_bytes < _SMALL_FAST_PATH_BYTES:
        logits = (policy_log1 - policy_log2) - (ref_log1 - ref_log2)
        return jnp.maximum(jnp.abs(logits) - epsilon, 0.0)

    inputs = [policy_log1, policy_log2, ref_log1, ref_log2]
    c = _pick_lane_width(b)
    if c is not None:
        return _loss_2d(inputs, b, c, dtype, epsilon)
    return _loss_1d(inputs, b, dtype, epsilon)


def _reference(p1, p2, r1, r2, epsilon):
    logits = (p1 - p2) - (r1 - r2)
    return jnp.maximum(jnp.abs(logits) - epsilon, 0.0)


def _run_case(key, b, epsilon, dtype=jnp.float32, atol=1e-6):
    k1, k2, k3, k4 = jax.random.split(key, 4)
    # log-probs are negative; use negative values for realism.
    p1 = -jax.random.uniform(k1, (b,), jnp.float32, 0.1, 5.0).astype(dtype)
    p2 = -jax.random.uniform(k2, (b,), jnp.float32, 0.1, 5.0).astype(dtype)
    r1 = -jax.random.uniform(k3, (b,), jnp.float32, 0.1, 5.0).astype(dtype)
    r2 = -jax.random.uniform(k4, (b,), jnp.float32, 0.1, 5.0).astype(dtype)

    loss = epsilon_insensitive_loss(p1, p2, r1, r2, epsilon)
    loss = jax.block_until_ready(loss)

    expected = _reference(p1, p2, r1, r2, epsilon)
    assert loss.shape == (b,), (loss.shape, b)
    assert loss.dtype == dtype, (loss.dtype, dtype)
    assert jnp.allclose(loss, expected, atol=atol), (b, dtype)


if __name__ == "__main__":
    key = jax.random.PRNGKey(0)
    keys = jax.random.split(key, 5)
    epsilon = 0.5

    # Tiny batch (matches the module's typical per-example log-prob vectors):
    # small-batch jnp fast path.
    _run_case(keys[0], 8, epsilon)

    # Aligned batch (multiple of 2048): copy-free 2-D view, slab split into two
    # balanced row blocks (v7x two-TensorCore sharding).
    _run_case(keys[1], 262144, epsilon)

    # Aligned batch with a ragged last row block (r=257 rows, block height 256).
    _run_case(keys[2], 526336, epsilon)

    # bf16 inputs: byte-based tile sizing keeps the same VMEM footprint.
    _run_case(keys[3], 262144, epsilon, dtype=jnp.bfloat16, atol=2e-2)

    # Non-multiple-of-128 batch: direct 1-D BlockSpec path (no pad copies),
    # two blocks with a ragged, Pallas-clipped last block.
    _run_case(keys[4], 300001, epsilon)

    print("KERNEL_OK")
</pallas_src>

<mosaic_0001>
module attributes {stable_mosaic.version = 11 : i64} {
  func.func @_eps_insensitive_kernel(%arg0: i32, %arg1: memref<64x2048xf32, #tpu.memory_space<vmem>>, %arg2: memref<64x2048xf32, #tpu.memory_space<vmem>>, %arg3: memref<64x2048xf32, #tpu.memory_space<vmem>>, %arg4: memref<64x2048xf32, #tpu.memory_space<vmem>>, %arg5: memref<64x2048xf32, #tpu.memory_space<vmem>>) attributes {dimension_semantics = [#tpu.dimension_semantics<parallel>], iteration_bounds = array<i64: 2>, scalar_prefetch = 0 : i64, scratch_operands = 0 : i64, tpu.core_type = #tpu.core_type<tc>, window_params = [{transform_indices = @transform_0, window_bounds = array<i64: 64, 2048>}, {transform_indices = @transform_1, window_bounds = array<i64: 64, 2048>}, {transform_indices = @transform_2, window_bounds = array<i64: 64, 2048>}, {transform_indices = @transform_3, window_bounds = array<i64: 64, 2048>}, {transform_indices = @transform_4, window_bounds = array<i64: 64, 2048>}]} {
    %c0 = arith.constant 0 : index
    %c0_0 = arith.constant 0 : index
    %0 = vector.load %arg1[%c0, %c0_0] : memref<64x2048xf32, #tpu.memory_space<vmem>>, vector<64x2048xf32>
    %c0_1 = arith.constant 0 : index
    %c0_2 = arith.constant 0 : index
    %1 = vector.load %arg2[%c0_1, %c0_2] : memref<64x2048xf32, #tpu.memory_space<vmem>>, vector<64x2048xf32>
    %2 = arith.subf %0, %1 : vector<64x2048xf32>
    %c0_3 = arith.constant 0 : index
    %c0_4 = arith.constant 0 : index
    %3 = vector.load %arg3[%c0_3, %c0_4] : memref<64x2048xf32, #tpu.memory_space<vmem>>, vector<64x2048xf32>
    %c0_5 = arith.constant 0 : index
    %c0_6 = arith.constant 0 : index
    %4 = vector.load %arg4[%c0_5, %c0_6] : memref<64x2048xf32, #tpu.memory_space<vmem>>, vector<64x2048xf32>
    %5 = arith.subf %3, %4 : vector<64x2048xf32>
    %6 = arith.subf %2, %5 : vector<64x2048xf32>
    %7 = math.absf %6 : vector<64x2048xf32>
    %cst = arith.constant 5.000000e-01 : f32
    %8 = vector.broadcast %cst : f32 to vector<64x2048xf32>
    %9 = arith.subf %7, %8 : vector<64x2048xf32>
    %cst_7 = arith.constant 0.000000e+00 : f32
    %10 = vector.broadcast %cst_7 : f32 to vector<64x2048xf32>
    %11 = arith.maximumf %9, %10 : vector<64x2048xf32>
    %c0_8 = arith.constant 0 : index
    %c0_9 = arith.constant 0 : index
    %12 = vector.load %arg5[%c0_8, %c0_9] : memref<64x2048xf32, #tpu.memory_space<vmem>>, vector<64x2048xf32>
    tpu.vector_store %arg5[%c0_8, %c0_9], %11 {strides = array<i32>} : memref<64x2048xf32, #tpu.memory_space<vmem>>, vector<64x2048xf32>,
    return
  }
  func.func @transform_0(%arg0: i32) -> (i32, i32) {
    %c0_i32 = arith.constant 0 : i32
    %c0_i32_0 = arith.constant 0 : i32
    return %arg0, %c0_i32 : i32, i32
  }
  func.func @transform_1(%arg0: i32) -> (i32, i32) {
    %c0_i32 = arith.constant 0 : i32
    %c0_i32_0 = arith.constant 0 : i32
    return %arg0, %c0_i32 : i32, i32
  }
  func.func @transform_2(%arg0: i32) -> (i32, i32) {
    %c0_i32 = arith.constant 0 : i32
    %c0_i32_0 = arith.constant 0 : i32
    return %arg0, %c0_i32 : i32, i32
  }
  func.func @transform_3(%arg0: i32) -> (i32, i32) {
    %c0_i32 = arith.constant 0 : i32
    %c0_i32_0 = arith.constant 0 : i32
    return %arg0, %c0_i32 : i32, i32
  }
  func.func @transform_4(%arg0: i32) -> (i32, i32) {
    %c0_i32 = arith.constant 0 : i32
    %c0_i32_0 = arith.constant 0 : i32
    return %arg0, %c0_i32 : i32, i32
  }
}

</mosaic_0001>

<bundles_post_ra>
// kernel: tpu_custom_call.1
= control target key start
LH: loop header
LB: loop body
LE: loop exit
PB: predicated region body
PF: predicated region fallthrough
CT: control target
= control target key end

     0   :  { %s3321_s0 = inlined_call_operand.hbm [shape: f32[128,2048], index: 0, kind: input, shape index: {}]   ;;  %s3322_s1 = inlined_call_operand.hbm [shape: f32[128,2048], index: 1, kind: input, shape index: {}]   ;;  %s3323_s2 = inlined_call_operand.hbm [shape: f32[128,2048], index: 2, kind: input, shape index: {}]   ;;  %s3324_s3 = inlined_call_operand.hbm [shape: f32[128,2048], index: 3, kind: input, shape index: {}]   ;;  %s3325_s4 = inlined_call_operand.hbm [shape: f32[128,2048], index: 4, kind: output, shape index: {}]  }
   0x1   :  { %3332 = sst [smem:[#allocation16_spill]] %s3321_s0 }
   0x2   :  { %3333 = sst [smem:[#allocation17_spill]] %s3322_s1 }
   0x3   :  { %9 = vsyncpa [#allocation3], 0 }
   0x4   :  { %11 = vsyncpa [#allocation3 + $0x1], 0 }
   0x5   :  { %12 = vsyncpa [#allocation6], 0 }
   0x6   :  { %14 = vsyncpa [#allocation6 + $0x1], 0 }
   0x7   :  { %15 = vsyncpa [#allocation9], 0 }
   0x8   :  { %17 = vsyncpa [#allocation9 + $0x1], 0 }
   0x9   :  { %18 = vsyncpa [#allocation4], 0 }
   0xa   :  { %20 = vsyncpa [#allocation4 + $0x1], 0  ;;  %s2368_s15 = smov 0   ;;  %s2370_s16 = smov 0  }
   0xb   :  { %s2372_s17 = smov 0   ;;  %s2374_s18 = smov 0  }
   0xc LB: > { %s2389_s19 = sadd.s32 4294967295, %s2332_s18   ;;  %s1904_s20 = sadd.s32 4294967294, %s2332_s18   ;;  %s2332_s18 = sphi %s2374_s18, %s3355_s18   ;;  %s2328_s17 = sphi %s2372_s17, %s3354_s17   ;;  %s2324_s16 = sphi %s2370_s16, %s3353_s16   ;;  %s2320_s15 = sphi %s2368_s15, %s3352_s15  }
   0xd   : > { %s2393_s21 = sadd.s32 1, %s2332_s18   ;;  %s33_s22 = sadd.s32 1, %s2328_s17 }
   0xe   : > { %s30_s23 = ssub.s32 %s2332_s18, %s2393_s21  ;;  %p40_p0 = scmp.ne.s32.totalorder %s2328_s17, %s2324_s16 }
   0xf   : > { %p31_p1 = scmp.eq.s32.totalorder %s30_s23, 0  ;;  %p41_p2 = scmp.eq.s32.totalorder %s2332_s18, 0 }
  0x10   : > { %p46_p3 = scmp.ne.s32.totalorder %s2324_s16, %s2320_s15  ;;  %p47_p4 = scmp.eq.s32.totalorder %s2389_s19, 0 }
  0x11   : > { %s2405_s24 = scalar_select %p31_p1, %s2328_s17, %s33_s22  }
  0x12   : > { %p42_p5 = por %p41_p2, %p40_p0  ;;  %p2407_p6 = por %p47_p4, %p46_p3 }
  0x13   : > { %3334 = sst [smem:[#allocation15_spill]] %s2405_s24  ;;  %p148_p7 = scmp.eq.s32.totalorder %s2389_s19, 1 }
  0x14   : > { %s3335_s25 = scalar_select %p2407_p6, 1, 0 }
  0x15   : > { %p154_p8 = scmp.eq.s32.totalorder %s1904_s20, 1  ;;  %p2100_p10 = scmp.lt.s32.totalorder %s2332_s18, 2 }
  0x16   : > { %p2414_p11 = por %p148_p7, %p40_p0  ;;  %s2423_s28 = sand.u32 1, %s2328_s17  }
  0x17   : > { %p2418_p12 = por %p154_p8, %p46_p3  ;;  %s2426_s29 = sshll.u32 %s2332_s18, 14 }
  0x18   : > { %s3336_s26 = scalar_select %p2414_p11, 1, 0 }
  0x19   : > { %s3337_s27 = scalar_select %p2418_p12, 1, 0 }
  0x1a   : > { %s2429_s30 = sshll.u32 %s2423_s28, 10  ;;  %p2431_p13 = pnand %p2100_p10, %p42_p5 }
  0x1b   : > { %s196_s6 = sand.u32 1, %s2332_s18   ;;  %s3339_s1 = sld [smem:[#allocation17_spill]] }
  0x1c   : > { %s200_s10 = scalar_lea.vmem [#allocation5], %s2429_s30  ;;  %s2446_s12 = scalar_lea.sflag [#allocation6], %s196_s6 }
  0x1d   : > { %s208_s11 = sshll.u32 %s200_s10, 4  ;;  %p2452_p2 = pneg %p2431_p13  ;;  %s2443_s11 = int_to_ptr.vmem [resolvable:$true] %s208_s11 }
  0x21   : > { %s2440_s9 = scalar_lea.hbm %s3339_s1, %s2426_s29  ;;  %s2143_s23 = scalar_lea.hbm %s3339_s1, 32768 }
  0x22   : > { %s2138_s13 = scalar_lea.hbm %s2440_s9, 16384  ;;  %p2144_p5 = scmp.lt.u32.totalorder %s2440_s9, %s3339_s1 }
  0x23   : > { %p2139_p1 = scmp.ne.s32.totalorder %s2440_s9, %s2138_s13  ;;  %p2145_p7 = scmp.lt.u32.totalorder %s2143_s23, %s2138_s13 }
  0x24   : > { %p2147_p10 = scmp.lt.u32.totalorder %s2138_s13, %s2440_s9 }
  0x25   : > { %p2141_p3 = pnand %p2452_p2, %p2139_p1  ;;  %p2146_p8 = por %p2145_p7, %p2144_p5 }
  0x27   : > { %p2142_p4 = pneg %p2141_p3  ;;  %p2148_p9 = por %p2147_p10, %p2146_p8 }
  0x29   : > { %p2149_p0 = pnand %p2148_p9, %p2142_p4 }
  0x2b   : > { %2152 = shalt.err (!%p2149_p0)
}
  0x2c   : > { %s2153_s6 = scalar_lea.vmem %s2443_s11, 16384  ;;  %s2334_s10 = smov [#allocation5]  }
  0x2d   : > { %p2154_p1 = scmp.ne.s32.totalorder %s2443_s11, %s2153_s6  ;;  %s2158_s20 = sshll.u32 %s2334_s10, 4  ;;  %s2159_s20 = int_to_ptr.vmem [resolvable:$false] %s2158_s20 }
  0x2e   : > { %s2160_s22 = scalar_lea.vmem %s2159_s20, 32768  ;;  %p2161_p11 = scmp.lt.s32.totalorder %s2443_s11, %s2159_s20 }
  0x2f   : > { %p2156_p3 = pnand %p2154_p1, %p2452_p2  ;;  %p2162_p6 = scmp.lt.s32.totalorder %s2160_s22, %s2153_s6 }
  0x31   : > { %p2157_p12 = pneg %p2156_p3  ;;  %p2163_p5 = por %p2162_p6, %p2161_p11 }
  0x33   : > { %p2164_p7 = pnand %p2163_p5, %p2157_p12 }
  0x35   : > { %2167 = shalt.err (!%p2164_p7)
}
  0x36   : > { %s3328_s13 = smov 2048   ;;  %s3330_s23 = smov 128  }
  0x37   : > { %2089 = dma.hbm_to_vmem [thread:$0]  (!%p2431_p13), %s2440_s9, 16384, %s2443_s11, %s2446_s12, %s3328_s13, %s3328_s13, %s3330_s23  }
  0x38   : > { %p260_p6 = scmp.lt.s32.totalorder %s2332_s18, 3  ;;  %s3341_s0 = sld [smem:[#allocation16_spill]] }
  0x39   : > { %p3342_p9 = scmp.ge.s32.totalorder %s2332_s18, 1  ;;  %s178_s20 = scalar_lea.vmem [#allocation2], %s2429_s30 }
  0x3a   : > { %s186_s22 = sshll.u32 %s178_s20, 4  ;;  %s175_s9 = scalar_lea.sflag [#allocation3], %s2423_s28  ;;  %s2493_s22 = int_to_ptr.vmem [resolvable:$true] %s186_s22 }
  0x3b   : > { %p2488_p11 = pnand %p3342_p9, %p260_p6 }
  0x3d   : > { %s3343_s10 = scalar_select %p2488_p11, 1, 0 }
  0x3e   : > { %s2484_s6 = scalar_lea.hbm %s3341_s0, %s2426_s29  ;;  %s2173_s13 = scalar_lea.hbm %s3341_s0, 32768 }
  0x3f   : > { %s2168_s11 = scalar_lea.hbm %s2484_s6, 16384  ;;  %p2174_p8 = scmp.lt.u32.totalorder %s2484_s6, %s3341_s0 }
  0x40   : > { %p2169_p12 = scmp.ne.s32.totalorder %s2484_s6, %s2168_s11  ;;  %p2175_p10 = scmp.lt.u32.totalorder %s2173_s13, %s2168_s11 }
  0x41   : > { %p2177_p3 = scmp.lt.u32.totalorder %s2168_s11, %s2484_s6 }
  0x42   : > { %p2171_p0 = pnand %p2169_p12, %p2452_p2  ;;  %p2176_p1 = por %p2175_p10, %p2174_p8 }
  0x44   : > { %p2172_p4 = pneg %p2171_p0  ;;  %p2178_p5 = por %p2177_p3, %p2176_p1 }
  0x46   : > { %p2179_p7 = pnand %p2178_p5, %p2172_p4 }
  0x48   : > { %2182 = shalt.err (!%p2179_p7)
}
  0x49   : > { %s2183_s20 = scalar_lea.vmem %s2493_s22, 16384  ;;  %s2337_s7 = smov [#allocation2]  }
  0x4a   : > { %p2184_p6 = scmp.ne.s32.totalorder %s2493_s22, %s2183_s20  ;;  %s2188_s8 = sshll.u32 %s2337_s7, 4  ;;  %s2189_s8 = int_to_ptr.vmem [resolvable:$false] %s2188_s8 }
  0x4b   : > { %s2190_s1 = scalar_lea.vmem %s2189_s8, 32768  ;;  %p2191_p0 = scmp.lt.s32.totalorder %s2493_s22, %s2189_s8 }
  0x4c   : > { %p2186_p9 = pnand %p2184_p6, %p2452_p2  ;;  %p2192_p11 = scmp.lt.s32.totalorder %s2190_s1, %s2183_s20 }
  0x4e   : > { %p2187_p12 = pneg %p2186_p9  ;;  %p2193_p8 = por %p2192_p11, %p2191_p0 }
  0x50   : > { %p2194_p10 = pnand %p2193_p8, %p2187_p12 }
  0x52   : > { %2197 = shalt.err (!%p2194_p10)
}
  0x53   : > { %s3344_s13 = smov 128   ;;  %s3345_s23 = smov 2048  }
  0x54   : > { %2086 = dma.hbm_to_vmem [thread:$0]  (!%p2431_p13), %s2484_s6, 16384, %s2493_s22, %s175_s9, %s3345_s23, %s3345_s23, %s3344_s13  }
  0x55   : > { %s2526_s20 = scalar_lea.hbm %s3323_s2, %s2426_s29  ;;  %s222_s8 = scalar_lea.vmem [#allocation7], %s2429_s30 }
  0x56   : > { %s230_s1 = sshll.u32 %s222_s8, 4  ;;  %s2198_s0 = scalar_lea.hbm %s2526_s20, 16384  ;;  %s2529_s1 = int_to_ptr.vmem [resolvable:$true] %s230_s1 }
  0x57   : > { %p2199_p11 = scmp.ne.s32.totalorder %s2526_s20, %s2198_s0  ;;  %s2203_s22 = scalar_lea.hbm %s3323_s2, 32768 }
  0x58   : > { %p2204_p3 = scmp.lt.u32.totalorder %s2526_s20, %s3323_s2  ;;  %p2205_p5 = scmp.lt.u32.totalorder %s2203_s22, %s2198_s0 }
  0x59   : > { %p2201_p4 = pnand %p2199_p11, %p2452_p2  ;;  %p2207_p6 = scmp.lt.u32.totalorder %s2198_s0, %s2526_s20 }
  0x5a   : > { %p2206_p7 = por %p2205_p5, %p2204_p3 }
  0x5b   : > { %p2202_p1 = pneg %p2201_p4 }
  0x5c   : > { %p2208_p9 = por %p2207_p6, %p2206_p7 }
  0x5e   : > { %p2209_p12 = pnand %p2208_p9, %p2202_p1 }
  0x60   : > { %2212 = shalt.err (!%p2209_p12)
}
  0x61   : > { %s2213_s7 = scalar_lea.vmem %s2529_s1, 16384  ;;  %s2338_s24 = smov [#allocation7]  }
  0x62   : > { %p2214_p0 = scmp.ne.s32.totalorder %s2529_s1, %s2213_s7  ;;  %s2218_s8 = sshll.u32 %s2338_s24, 4  ;;  %s2219_s8 = int_to_ptr.vmem [resolvable:$false] %s2218_s8 }
  0x63   : > { %s2220_s6 = scalar_lea.vmem %s2219_s8, 32768  ;;  %p2221_p11 = scmp.lt.s32.totalorder %s2529_s1, %s2219_s8 }
  0x64   : > { %p2216_p8 = pnand %p2214_p0, %p2452_p2  ;;  %p2222_p4 = scmp.lt.s32.totalorder %s2220_s6, %s2213_s7 }
  0x66   : > { %p2217_p10 = pneg %p2216_p8  ;;  %p2223_p3 = por %p2222_p4, %p2221_p11 }
  0x68   : > { %p2224_p5 = pnand %p2223_p3, %p2217_p10 }
  0x6a   : > { %2227 = shalt.err (!%p2224_p5)
}
  0x6b   : > { %2092 = dma.hbm_to_vmem [thread:$0]  (!%p2431_p13), %s2526_s20, 16384, %s2529_s1, %s2446_s12, %s3345_s23, %s3345_s23, %s3344_s13  }
  0x6c   : > { %s2560_s9 = scalar_lea.hbm %s3324_s3, %s2426_s29  ;;  %s244_s11 = scalar_lea.vmem [#allocation8], %s2429_s30 }
  0x6d   : > { %s252_s7 = sshll.u32 %s244_s11, 4  ;;  %s241_s24 = scalar_lea.sflag [#allocation9], %s2423_s28  ;;  %s2563_s7 = int_to_ptr.vmem [resolvable:$true] %s252_s7 }
  0x6e   : > { %s2228_s8 = scalar_lea.hbm %s2560_s9, 16384  ;;  %s2233_s1 = scalar_lea.hbm %s3324_s3, 32768 }
  0x6f   : > { %p2229_p1 = scmp.ne.s32.totalorder %s2560_s9, %s2228_s8  ;;  %p2234_p9 = scmp.lt.u32.totalorder %s2560_s9, %s3324_s3 }
  0x70   : > { %p2235_p12 = scmp.lt.u32.totalorder %s2233_s1, %s2228_s8  ;;  %p2237_p8 = scmp.lt.u32.totalorder %s2228_s8, %s2560_s9 }
  0x71   : > { %p2231_p7 = pnand %p2229_p1, %p2452_p2 }
  0x72   : > { %p2236_p0 = por %p2235_p12, %p2234_p9 }
  0x73   : > { %p2232_p6 = pneg %p2231_p7 }
  0x74   : > { %p2238_p10 = por %p2237_p8, %p2236_p0 }
  0x76   : > { %p2239_p11 = pnand %p2238_p10, %p2232_p6 }
  0x78   : > { %2242 = shalt.err (!%p2239_p11)
}
  0x79   : > { %s2243_s30 = scalar_lea.vmem %s2563_s7, 16384  ;;  %s2339_s0 = smov [#allocation8]  }
  0x7a   : > { %p2244_p4 = scmp.ne.s32.totalorder %s2563_s7, %s2243_s30  ;;  %s2248_s22 = sshll.u32 %s2339_s0, 4  ;;  %s2249_s22 = int_to_ptr.vmem [resolvable:$false] %s2248_s22 }
  0x7b   : > { %s2250_s11 = scalar_lea.vmem %s2249_s22, 32768  ;;  %p2251_p1 = scmp.lt.s32.totalorder %s2563_s7, %s2249_s22 }
  0x7c   : > { %p2246_p3 = pnand %p2244_p4, %p2452_p2  ;;  %p2252_p7 = scmp.lt.s32.totalorder %s2250_s11, %s2243_s30 }
  0x7e   : > { %p2247_p5 = pneg %p2246_p3  ;;  %p2253_p9 = por %p2252_p7, %p2251_p1 }
  0x80   : > { %p2254_p12 = pnand %p2253_p9, %p2247_p5 }
  0x82   : > { %2257 = shalt.err (!%p2254_p12)
}
  0x83   : > { %2095 = dma.hbm_to_vmem [thread:$0]  (!%p2431_p13), %s2560_s9, 16384, %s2563_s7, %s241_s24, %s3345_s23, %s3345_s23, %s3344_s13  }
  0x84   : > { %p3346_p2 = scmp.ne.s32.totalorder %s3343_s10, 0 }
  0x85   : > { %s2595_s14 = sand.u32 (!%p3346_p2), 1, %s2324_s16   ;;  %p3347_p6 = scmp.ne.s32.totalorder (!%p3346_p2), %s3335_s25, 0 }
  0x86   : > { %264 = sbr.rel (%p3346_p2) target bundleno = 378 (0x17a), region = 36  ;;  %s2598_s8 = sshll.u32 (!%p3346_p2), %s2595_s14, 10 }
  0x87   : > { %s267_s5 = scalar_lea.sflag (!%p3346_p2), [#allocation3], %s2595_s14  ;;  %s2602_s12 = scalar_lea.vmem (!%p3346_p2), [#allocation2], %s2598_s8 }
  0x8d   : > { %2303 = dma.done.wait (%p3347_p6), %s267_s5, 16384  }
  0x8e   : > { %2305 = vsyncadd (%p3347_p6), %s267_s5, 4294950912  ;;  %s275_s28 = sand.u32 1, %s2389_s19   ;;  %s2610_s13 = scalar_lea.vmem [#allocation5], %s2598_s8 }
  0x8f   : > { %s276_s10 = scalar_lea.sflag [#allocation6], %s275_s28 }
  0x90   : > { %2307 = dma.done.wait (%p3347_p6), %s276_s10, 32768  }
  0x91   : > { %2309 = vsyncadd (%p3347_p6), %s276_s10, 4294934528  ;;  %s2617_s23 = scalar_lea.vmem [#allocation7], %s2598_s8  ;;  %s294_s9 = scalar_lea.sflag [#allocation9], %s2595_s14 }
  0x92   : > { %s2621_s7 = scalar_lea.vmem [#allocation8], %s2598_s8 }
  0x93   : > { %2311 = dma.done.wait (%p3347_p6), %s294_s9, 16384  }
  0x94   : > { %2313 = vsyncadd (%p3347_p6), %s294_s9, 4294950912  ;;  %v342_v0 = vld [vmem:[%s2602_s12] sm:$0xff]  ;;  %v343_v5 = vld [vmem:[%s2602_s12 + $0x8] sm:$0xff]  ;;  %s2663_s25 = scalar_lea.vmem [#allocation10], %s2598_s8  ;;  %s2072_s24 = sshll.u32 %s2389_s19, 14 }
  0x95   : > { %v470_v1 = vld [vmem:[%s2610_s13] sm:$0xff]  ;;  %v471_v6 = vld [vmem:[%s2610_s13 + $0x8] sm:$0xff]  ;;  %v344_v11 = vld [vmem:[%s2602_s12 + $0x10] sm:$0xff]  ;;  %s1765_s20 = sshll.u32 %s2663_s25, 4  ;;  %s3273_s6 = scalar_lea.hbm %s3325_s4, %s2072_s24  ;;  %s3275_s20 = int_to_ptr.vmem [resolvable:$true] %s1765_s20 }
  0x96   : > { %v726_v2 = vld [vmem:[%s2617_s23] sm:$0xff]  ;;  %v598_v3 = vsub.f32 %v342_v0, %v470_v1  ;;  %v599_v8 = vsub.f32 %v343_v5, %v471_v6  ;;  %v727_v9 = vld [vmem:[%s2617_s23 + $0x8] sm:$0xff]  ;;  %v472_v13 = vld [vmem:[%s2610_s13 + $0x10] sm:$0xff]  ;;  %s1751_s19 = scalar_lea.sflag [#allocation4], %s2595_s14  ;;  %s2258_s30 = scalar_lea.vmem %s3275_s20, 16384 }
  0x97   : > { %v854_v4 = vld [vmem:[%s2621_s7] sm:$0xff]  ;;  %v855_v10 = vld [vmem:[%s2621_s7 + $0x8] sm:$0xff]  ;;  %v728_v14 = vld [vmem:[%s2617_s23 + $0x10] sm:$0xff]  ;;  %v600_v17 = vsub.f32 %v344_v11, %v472_v13  ;;  %p2259_p13 = scmp.ne.s32.totalorder %s3275_s20, %s2258_s30  ;;  %p3348_p0 = scmp.ne.s32.totalorder %s3336_s26, 0 }
  0x98   : > { %v982_v7 = vsub.f32 %v726_v2, %v854_v4  ;;  %v983_v12 = vsub.f32 %v727_v9, %v855_v10  ;;  %v856_v15 = vld [vmem:[%s2621_s7 + $0x10] sm:$0xff]  ;;  %v345_v19 = vld [vmem:[%s2602_s12 + $0x18] sm:$0xff]  ;;  %v346_v25 = vld [vmem:[%s2602_s12 + $0x20] sm:$0xff]  ;;  %s2340_s0 = smov [#allocation10]  }
  0x99   : > { %v984_v18 = vsub.f32 %v728_v14, %v856_v15  ;;  %v473_v20 = vld [vmem:[%s2610_s13 + $0x18] sm:$0xff]  ;;  %v474_v26 = vld [vmem:[%s2610_s13 + $0x20] sm:$0xff]  ;;  %v347_v33 = vld [vmem:[%s2602_s12 + $0x28] sm:$0xff]  ;;  %p2260_p8 = pnand %p2259_p13, %p3348_p0  ;;  %s2262_s22 = sshll.u32 %s2340_s0, 4  ;;  %s2263_s22 = int_to_ptr.vmem [resolvable:$false] %s2262_s22 }
  0x9a   : > { %v1110_v16 = vsub.f32 %v598_v3, %v982_v7  ;;  %v729_v21 = vld [vmem:[%s2617_s23 + $0x18] sm:$0xff]  ;;  %v1111_v22 = vsub.f32 %v599_v8, %v983_v12  ;;  %v601_v23 = vsub.f32 %v345_v19, %v473_v20  ;;  %v602_v30 = vsub.f32 %v346_v25, %v474_v26  ;;  %v730_v31 = vld [vmem:[%s2617_s23 + $0x20] sm:$0xff]  ;;  %v475_v36 = vld [vmem:[%s2610_s13 + $0x28] sm:$0xff]  ;;  %s2264_s11 = scalar_lea.vmem %s2263_s22, 32768  ;;  %p2265_p11 = scmp.lt.s32.totalorder %s3275_s20, %s2263_s22 }
  0x9b   : > { %v857_v24 = vld [vmem:[%s2621_s7 + $0x18] sm:$0xff]  ;;  %v1112_v28 = vsub.f32 %v600_v17, %v984_v18  ;;  %v858_v32 = vld [vmem:[%s2621_s7 + $0x20] sm:$0xff]  ;;  %v731_v37 = vld [vmem:[%s2617_s23 + $0x28] sm:$0xff]  ;;  %v603_v42 = vsub.f32 %v347_v33, %v475_v36  ;;  %p2261_p10 = pneg %p2260_p8  ;;  %p2266_p4 = scmp.lt.s32.totalorder %s2264_s11, %s2258_s30 }
  0x9c   : > { %v1238_v27 = vand.u32 2147483647, %v1110_v16  ;;  %v985_v29 = vsub.f32 %v729_v21, %v857_v24  ;;  %v1239_v34 = vand.u32 2147483647, %v1111_v22  ;;  %v986_v35 = vsub.f32 %v730_v31, %v858_v32  ;;  %v859_v38 = vld [vmem:[%s2621_s7 + $0x28] sm:$0xff]  ;;  %v348_v43 = vld [vmem:[%s2602_s12 + $0x30] sm:$0xff] }
  0x9d   : > { %v1240_v40 = vand.u32 2147483647, %v1112_v28  ;;  %v476_v44 = vld [vmem:[%s2610_s13 + $0x30] sm:$0xff]  ;;  %v987_v48 = vsub.f32 %v731_v37, %v859_v38  ;;  %v349_v51 = vld [vmem:[%s2602_s12 + $0x38] sm:$0xff]  ;;  %v350_v63 = vld [vmem:[%s2602_s12 + $0x40] sm:$0xff]  ;;  %p2267_p3 = por %p2266_p4, %p2265_p11 }
  0x9e   : > { %v1929_v39 = vadd.f32 -0.5, %v1238_v27  ;;  %v1113_v41 = vsub.f32 %v601_v23, %v985_v29  ;;  %v732_v45 = vld [vmem:[%s2617_s23 + $0x30] sm:$0xff]  ;;  %v1930_v46 = vadd.f32 -0.5, %v1239_v34  ;;  %v1114_v47 = vsub.f32 %v602_v30, %v986_v35  ;;  %v477_v52 = vld [vmem:[%s2610_s13 + $0x38] sm:$0xff]  ;;  %v478_v0 = vld [vmem:[%s2610_s13 + $0x40] sm:$0xff] }
  0x9f   : > { %v604_v49 = vsub.f32 %v348_v43, %v476_v44  ;;  %v860_v50 = vld [vmem:[%s2621_s7 + $0x30] sm:$0xff]  ;;  %v1931_v54 = vadd.f32 -0.5, %v1240_v40  ;;  %v733_v57 = vld [vmem:[%s2617_s23 + $0x38] sm:$0xff]  ;;  %v1115_v61 = vsub.f32 %v603_v42, %v987_v48  ;;  %v605_v62 = vsub.f32 %v349_v51, %v477_v52  ;;  %v734_v1 = vld [vmem:[%s2617_s23 + $0x40] sm:$0xff]  ;;  %p2268_p5 = pnand %p2267_p3, %p2261_p10 }
  0xa0   : > { %v1494_v53 = vmax.f32 %v1929_v39, 0.0  ;;  %v1241_v55 = vand.u32 2147483647, %v1113_v41  ;;  %v988_v56 = vsub.f32 %v732_v45, %v860_v50  ;;  %v861_v58 = vld [vmem:[%s2621_s7 + $0x38] sm:$0xff]  ;;  %v1495_v59 = vmax.f32 %v1930_v46, 0.0  ;;  %v862_v6 = vld [vmem:[%s2621_s7 + $0x40] sm:$0xff] }
  0xa1   : > { %v1242_v60 = vand.u32 2147483647, %v1114_v47  ;;  %v1496_v2 = vmax.f32 %v1931_v54, 0.0  ;;  %v989_v5 = vsub.f32 %v733_v57, %v861_v58  ;;  %v351_v7 = vld [vmem:[%s2602_s12 + $0x48] sm:$0xff]  ;;  %v1243_v10 = vand.u32 2147483647, %v1115_v61 }
  0xa2   : > { %1622 = vst [vmem:[%s2663_s25] sm:$0xff] %v1494_v53  ;;  %v1932_v3 = vadd.f32 -0.5, %v1241_v55  ;;  %v1116_v4 = vsub.f32 %v604_v49, %v988_v56  ;;  %v479_v8 = vld [vmem:[%s2610_s13 + $0x48] sm:$0xff]  ;;  %1623 = vst [vmem:[%s2663_s25 + $0x8] sm:$0xff] %v1495_v59  ;;  %v606_v11 = vsub.f32 %v350_v63, %v478_v0  ;;  %v990_v12 = vsub.f32 %v734_v1, %v862_v6  ;;  %v352_v15 = vld [vmem:[%s2602_s12 + $0x50] sm:$0xff] }
  0xa3   : > { %v1933_v9 = vadd.f32 -0.5, %v1242_v60  ;;  %v735_v13 = vld [vmem:[%s2617_s23 + $0x48] sm:$0xff]  ;;  %1624 = vst [vmem:[%s2663_s25 + $0x10] sm:$0xff] %v1496_v2  ;;  %v1117_v18 = vsub.f32 %v605_v62, %v989_v5  ;;  %v607_v19 = vsub.f32 %v351_v7, %v479_v8  ;;  %v480_v20 = vld [vmem:[%s2610_s13 + $0x50] sm:$0xff]  ;;  %v1934_v24 = vadd.f32 -0.5, %v1243_v10  ;;  %v353_v27 = vld [vmem:[%s2602_s12 + $0x58] sm:$0xff] }
  0xa4   : > { %v863_v14 = vld [vmem:[%s2621_s7 + $0x48] sm:$0xff]  ;;  %v1497_v16 = vmax.f32 %v1932_v3, 0.0  ;;  %v1244_v17 = vand.u32 2147483647, %v1116_v4  ;;  %v736_v21 = vld [vmem:[%s2617_s23 + $0x50] sm:$0xff]  ;;  %v1118_v25 = vsub.f32 %v606_v11, %v990_v12  ;;  %v481_v28 = vld [vmem:[%s2610_s13 + $0x58] sm:$0xff]  ;;  %v608_v32 = vsub.f32 %v352_v15, %v480_v20 }
  0xa5   : > { %v864_v22 = vld [vmem:[%s2621_s7 + $0x50] sm:$0xff]  ;;  %v1498_v23 = vmax.f32 %v1933_v9, 0.0  ;;  %v991_v26 = vsub.f32 %v735_v13, %v863_v14  ;;  %v737_v29 = vld [vmem:[%s2617_s23 + $0x58] sm:$0xff]  ;;  %v1245_v31 = vand.u32 2147483647, %v1117_v18  ;;  %v354_v35 = vld [vmem:[%s2602_s12 + $0x60] sm:$0xff]  ;;  %v609_v40 = vsub.f32 %v353_v27, %v481_v28 }
  0xa6   : > { %1625 = vst [vmem:[%s2663_s25 + $0x18] sm:$0xff] %v1497_v16  ;;  %v1935_v30 = vadd.f32 -0.5, %v1244_v17  ;;  %v992_v33 = vsub.f32 %v736_v21, %v864_v22  ;;  %v865_v34 = vld [vmem:[%s2621_s7 + $0x58] sm:$0xff]  ;;  %v482_v36 = vld [vmem:[%s2610_s13 + $0x60] sm:$0xff]  ;;  %v1499_v37 = vmax.f32 %v1934_v24, 0.0  ;;  %v355_v43 = vld [vmem:[%s2602_s12 + $0x68] sm:$0xff] }
  0xa7   : > { %1626 = vst [vmem:[%s2663_s25 + $0x20] sm:$0xff] %v1498_v23  ;;  %v1246_v38 = vand.u32 2147483647, %v1118_v25  ;;  %v1119_v39 = vsub.f32 %v607_v19, %v991_v26  ;;  %v738_v41 = vld [vmem:[%s2617_s23 + $0x60] sm:$0xff]  ;;  %v1936_v45 = vadd.f32 -0.5, %v1245_v31  ;;  %v993_v47 = vsub.f32 %v737_v29, %v865_v34  ;;  %v483_v48 = vld [vmem:[%s2610_s13 + $0x68] sm:$0xff] }
  0xa8   : > { %v866_v42 = vld [vmem:[%s2621_s7 + $0x60] sm:$0xff]  ;;  %v1500_v44 = vmax.f32 %v1935_v30, 0.0  ;;  %v1120_v46 = vsub.f32 %v608_v32, %v992_v33  ;;  %v739_v49 = vld [vmem:[%s2617_s23 + $0x68] sm:$0xff]  ;;  %1627 = vst [vmem:[%s2663_s25 + $0x28] sm:$0xff] %v1499_v37  ;;  %v610_v53 = vsub.f32 %v354_v35, %v482_v36  ;;  %v356_v55 = vld [vmem:[%s2602_s12 + $0x70] sm:$0xff]  ;;  %v611_v61 = vsub.f32 %v355_v43, %v483_v48 }
  0xa9   : > { %v867_v50 = vld [vmem:[%s2621_s7 + $0x68] sm:$0xff]  ;;  %v1937_v51 = vadd.f32 -0.5, %v1246_v38  ;;  %v1247_v52 = vand.u32 2147483647, %v1119_v39  ;;  %v994_v54 = vsub.f32 %v738_v41, %v866_v42  ;;  %v484_v56 = vld [vmem:[%s2610_s13 + $0x70] sm:$0xff]  ;;  %v1501_v58 = vmax.f32 %v1936_v45, 0.0 }
  0xaa   : > { %v740_v57 = vld [vmem:[%s2617_s23 + $0x70] sm:$0xff]  ;;  %1628 = vst [vmem:[%s2663_s25 + $0x30] sm:$0xff] %v1500_v44  ;;  %v1248_v59 = vand.u32 2147483647, %v1120_v46  ;;  %v1121_v60 = vsub.f32 %v609_v40, %v993_v47  ;;  %v357_v63 = vld [vmem:[%s2602_s12 + $0x78] sm:$0xff]  ;;  %v995_v4 = vsub.f32 %v739_v49, %v867_v50  ;;  %v358_v7 = vld [vmem:[%s2602_s12 + $0x80] sm:$0xff]  ;;  %v612_v10 = vsub.f32 %v356_v55, %v484_v56 }
  0xab   : > { %v868_v62 = vld [vmem:[%s2621_s7 + $0x70] sm:$0xff]  ;;  %v485_v0 = vld [vmem:[%s2610_s13 + $0x78] sm:$0xff]  ;;  %v1502_v1 = vmax.f32 %v1937_v51, 0.0  ;;  %v1938_v2 = vadd.f32 -0.5, %v1247_v52  ;;  %v1122_v3 = vsub.f32 %v610_v53, %v994_v54  ;;  %1629 = vst [vmem:[%s2663_s25 + $0x38] sm:$0xff] %v1501_v58  ;;  %v486_v12 = vld [vmem:[%s2610_s13 + $0x80] sm:$0xff] }
  0xac   : > { %v741_v5 = vld [vmem:[%s2617_s23 + $0x78] sm:$0xff]  ;;  %v1939_v8 = vadd.f32 -0.5, %v1248_v59  ;;  %v1249_v9 = vand.u32 2147483647, %v1121_v60  ;;  %v996_v11 = vsub.f32 %v740_v57, %v868_v62  ;;  %v742_v13 = vld [vmem:[%s2617_s23 + $0x80] sm:$0xff]  ;;  %v1123_v17 = vsub.f32 %v611_v61, %v995_v4  ;;  %v359_v19 = vld [vmem:[%s2602_s12 + $0x88] sm:$0xff] }
  0xad   : > { %v869_v6 = vld [vmem:[%s2621_s7 + $0x78] sm:$0xff]  ;;  %v870_v14 = vld [vmem:[%s2621_s7 + $0x80] sm:$0xff]  ;;  %1630 = vst [vmem:[%s2663_s25 + $0x40] sm:$0xff] %v1502_v1  ;;  %v1503_v15 = vmax.f32 %v1938_v2, 0.0  ;;  %v1250_v16 = vand.u32 2147483647, %v1122_v3  ;;  %v613_v18 = vsub.f32 %v357_v63, %v485_v0  ;;  %v614_v30 = vsub.f32 %v358_v7, %v486_v12 }
  0xae   : > { %v487_v20 = vld [vmem:[%s2610_s13 + $0x88] sm:$0xff]  ;;  %v1504_v21 = vmax.f32 %v1939_v8, 0.0  ;;  %v1940_v22 = vadd.f32 -0.5, %v1249_v9  ;;  %v1124_v23 = vsub.f32 %v612_v10, %v996_v11  ;;  %v997_v24 = vsub.f32 %v741_v5, %v869_v6  ;;  %v360_v27 = vld [vmem:[%s2602_s12 + $0x90] sm:$0xff]  ;;  %v361_v39 = vld [vmem:[%s2602_s12 + $0x98] sm:$0xff] }
  0xaf   : > { %v743_v25 = vld [vmem:[%s2617_s23 + $0x88] sm:$0xff]  ;;  %1631 = vst [vmem:[%s2663_s25 + $0x48] sm:$0xff] %v1503_v15  ;;  %v1941_v28 = vadd.f32 -0.5, %v1250_v16  ;;  %v1251_v29 = vand.u32 2147483647, %v1123_v17  ;;  %v998_v31 = vsub.f32 %v742_v13, %v870_v14  ;;  %v488_v32 = vld [vmem:[%s2610_s13 + $0x90] sm:$0xff]  ;;  %v615_v38 = vsub.f32 %v359_v19, %v487_v20 }
  0xb0   : > { %v871_v26 = vld [vmem:[%s2621_s7 + $0x88] sm:$0xff]  ;;  %v744_v33 = vld [vmem:[%s2617_s23 + $0x90] sm:$0xff]  ;;  %1632 = vst [vmem:[%s2663_s25 + $0x50] sm:$0xff] %v1504_v21  ;;  %v1505_v35 = vmax.f32 %v1940_v22, 0.0  ;;  %v1252_v36 = vand.u32 2147483647, %v1124_v23  ;;  %v1125_v37 = vsub.f32 %v613_v18, %v997_v24  ;;  %v616_v50 = vsub.f32 %v360_v27, %v488_v32 }
  0xb1   : > { %v872_v34 = vld [vmem:[%s2621_s7 + $0x90] sm:$0xff]  ;;  %v489_v40 = vld [vmem:[%s2610_s13 + $0x98] sm:$0xff]  ;;  %v1506_v41 = vmax.f32 %v1941_v28, 0.0  ;;  %v1942_v42 = vadd.f32 -0.5, %v1251_v29  ;;  %v1126_v43 = vsub.f32 %v614_v30, %v998_v31  ;;  %v999_v44 = vsub.f32 %v743_v25, %v871_v26  ;;  %v362_v47 = vld [vmem:[%s2602_s12 + $0xa0] sm:$0xff] }
  0xb2   : > { %v745_v45 = vld [vmem:[%s2617_s23 + $0x98] sm:$0xff]  ;;  %1633 = vst [vmem:[%s2663_s25 + $0x58] sm:$0xff] %v1505_v35  ;;  %v1943_v48 = vadd.f32 -0.5, %v1252_v36  ;;  %v1253_v49 = vand.u32 2147483647, %v1125_v37  ;;  %v1000_v51 = vsub.f32 %v744_v33, %v872_v34  ;;  %v490_v52 = vld [vmem:[%s2610_s13 + $0xa0] sm:$0xff]  ;;  %v617_v58 = vsub.f32 %v361_v39, %v489_v40 }
  0xb3   : > { %v873_v46 = vld [vmem:[%s2621_s7 + $0x98] sm:$0xff]  ;;  %v746_v53 = vld [vmem:[%s2617_s23 + $0xa0] sm:$0xff]  ;;  %1634 = vst [vmem:[%s2663_s25 + $0x60] sm:$0xff] %v1506_v41  ;;  %v1507_v55 = vmax.f32 %v1942_v42, 0.0  ;;  %v1254_v56 = vand.u32 2147483647, %v1126_v43  ;;  %v1127_v57 = vsub.f32 %v615_v38, %v999_v44  ;;  %v618_v6 = vsub.f32 %v362_v47, %v490_v52 }
  0xb4   : > { %v874_v54 = vld [vmem:[%s2621_s7 + $0xa0] sm:$0xff]  ;;  %v363_v59 = vld [vmem:[%s2602_s12 + $0xa8] sm:$0xff]  ;;  %v1508_v61 = vmax.f32 %v1943_v48, 0.0  ;;  %v1944_v62 = vadd.f32 -0.5, %v1253_v49  ;;  %v1128_v63 = vsub.f32 %v616_v50, %v1000_v51  ;;  %v1001_v0 = vsub.f32 %v745_v45, %v873_v46  ;;  %v364_v3 = vld [vmem:[%s2602_s12 + $0xb0] sm:$0xff] }
  0xb5   : > { %v491_v60 = vld [vmem:[%s2610_s13 + $0xa8] sm:$0xff]  ;;  %1635 = vst [vmem:[%s2663_s25 + $0x68] sm:$0xff] %v1507_v55  ;;  %v1945_v4 = vadd.f32 -0.5, %v1254_v56  ;;  %v1255_v5 = vand.u32 2147483647, %v1127_v57  ;;  %v1002_v7 = vsub.f32 %v746_v53, %v874_v54  ;;  %v492_v8 = vld [vmem:[%s2610_s13 + $0xb0] sm:$0xff] }
  0xb6   : > { %v747_v1 = vld [vmem:[%s2617_s23 + $0xa8] sm:$0xff]  ;;  %v748_v9 = vld [vmem:[%s2617_s23 + $0xb0] sm:$0xff]  ;;  %1636 = vst [vmem:[%s2663_s25 + $0x70] sm:$0xff] %v1508_v61  ;;  %v1509_v11 = vmax.f32 %v1944_v62, 0.0  ;;  %v1256_v12 = vand.u32 2147483647, %v1128_v63  ;;  %v1129_v13 = vsub.f32 %v617_v58, %v1001_v0  ;;  %v619_v14 = vsub.f32 %v363_v59, %v491_v60 }
  0xb7   : > { %v875_v2 = vld [vmem:[%s2621_s7 + $0xa8] sm:$0xff]  ;;  %v876_v10 = vld [vmem:[%s2621_s7 + $0xb0] sm:$0xff]  ;;  %v365_v15 = vld [vmem:[%s2602_s12 + $0xb8] sm:$0xff]  ;;  %v1510_v17 = vmax.f32 %v1945_v4, 0.0  ;;  %v1946_v18 = vadd.f32 -0.5, %v1255_v5  ;;  %v1130_v19 = vsub.f32 %v618_v6, %v1002_v7  ;;  %v620_v26 = vsub.f32 %v364_v3, %v492_v8 }
  0xb8   : > { %v493_v16 = vld [vmem:[%s2610_s13 + $0xb8] sm:$0xff]  ;;  %v1003_v20 = vsub.f32 %v747_v1, %v875_v2  ;;  %v366_v23 = vld [vmem:[%s2602_s12 + $0xc0] sm:$0xff]  ;;  %1637 = vst [vmem:[%s2663_s25 + $0x78] sm:$0xff] %v1509_v11  ;;  %v1947_v24 = vadd.f32 -0.5, %v1256_v12  ;;  %v1257_v25 = vand.u32 2147483647, %v1129_v13  ;;  %v1004_v27 = vsub.f32 %v748_v9, %v876_v10 }
  0xb9   : > { %v749_v21 = vld [vmem:[%s2617_s23 + $0xb8] sm:$0xff]  ;;  %v494_v28 = vld [vmem:[%s2610_s13 + $0xc0] sm:$0xff]  ;;  %1638 = vst [vmem:[%s2663_s25 + $0x80] sm:$0xff] %v1510_v17  ;;  %v1511_v31 = vmax.f32 %v1946_v18, 0.0  ;;  %v1258_v32 = vand.u32 2147483647, %v1130_v19  ;;  %v621_v34 = vsub.f32 %v365_v15, %v493_v16 }
  0xba   : > { %v877_v22 = vld [vmem:[%s2621_s7 + $0xb8] sm:$0xff]  ;;  %v750_v29 = vld [vmem:[%s2617_s23 + $0xc0] sm:$0xff]  ;;  %v1131_v33 = vsub.f32 %v619_v14, %v1003_v20  ;;  %v367_v35 = vld [vmem:[%s2602_s12 + $0xc8] sm:$0xff]  ;;  %v1512_v37 = vmax.f32 %v1947_v24, 0.0  ;;  %v1948_v38 = vadd.f32 -0.5, %v1257_v25  ;;  %v1132_v39 = vsub.f32 %v620_v26, %v1004_v27 }
  0xbb   : > { %v878_v30 = vld [vmem:[%s2621_s7 + $0xc0] sm:$0xff]  ;;  %v495_v36 = vld [vmem:[%s2610_s13 + $0xc8] sm:$0xff]  ;;  %v1005_v40 = vsub.f32 %v749_v21, %v877_v22  ;;  %v368_v43 = vld [vmem:[%s2602_s12 + $0xd0] sm:$0xff]  ;;  %1639 = vst [vmem:[%s2663_s25 + $0x88] sm:$0xff] %v1511_v31  ;;  %v1949_v44 = vadd.f32 -0.5, %v1258_v32  ;;  %v622_v46 = vsub.f32 %v366_v23, %v494_v28 }
  0xbc   : > { %v751_v41 = vld [vmem:[%s2617_s23 + $0xc8] sm:$0xff]  ;;  %v1259_v45 = vand.u32 2147483647, %v1131_v33  ;;  %v1006_v47 = vsub.f32 %v750_v29, %v878_v30  ;;  %v496_v48 = vld [vmem:[%s2610_s13 + $0xd0] sm:$0xff]  ;;  %1640 = vst [vmem:[%s2663_s25 + $0x90] sm:$0xff] %v1512_v37  ;;  %v1513_v51 = vmax.f32 %v1948_v38, 0.0  ;;  %v623_v54 = vsub.f32 %v367_v35, %v495_v36 }
  0xbd   : > { %v879_v42 = vld [vmem:[%s2621_s7 + $0xc8] sm:$0xff]  ;;  %v752_v49 = vld [vmem:[%s2617_s23 + $0xd0] sm:$0xff]  ;;  %v1260_v52 = vand.u32 2147483647, %v1132_v39  ;;  %v1133_v53 = vsub.f32 %v621_v34, %v1005_v40  ;;  %v369_v55 = vld [vmem:[%s2602_s12 + $0xd8] sm:$0xff]  ;;  %v1514_v57 = vmax.f32 %v1949_v44, 0.0  ;;  %v624_v2 = vsub.f32 %v368_v43, %v496_v48 }
  0xbe   : > { %v880_v50 = vld [vmem:[%s2621_s7 + $0xd0] sm:$0xff]  ;;  %v497_v56 = vld [vmem:[%s2610_s13 + $0xd8] sm:$0xff]  ;;  %v1950_v58 = vadd.f32 -0.5, %v1259_v45  ;;  %v1134_v59 = vsub.f32 %v622_v46, %v1006_v47  ;;  %v1007_v60 = vsub.f32 %v751_v41, %v879_v42  ;;  %v370_v63 = vld [vmem:[%s2602_s12 + $0xe0] sm:$0xff]  ;;  %1641 = vst [vmem:[%s2663_s25 + $0x98] sm:$0xff] %v1513_v51 }
  0xbf   : > { %v753_v61 = vld [vmem:[%s2617_s23 + $0xd8] sm:$0xff]  ;;  %v1951_v0 = vadd.f32 -0.5, %v1260_v52  ;;  %v1261_v1 = vand.u32 2147483647, %v1133_v53  ;;  %v1008_v3 = vsub.f32 %v752_v49, %v880_v50  ;;  %v498_v4 = vld [vmem:[%s2610_s13 + $0xe0] sm:$0xff]  ;;  %1642 = vst [vmem:[%s2663_s25 + $0xa0] sm:$0xff] %v1514_v57  ;;  %v625_v10 = vsub.f32 %v369_v55, %v497_v56 }
  0xc0   : > { %v881_v62 = vld [vmem:[%s2621_s7 + $0xd8] sm:$0xff]  ;;  %v754_v5 = vld [vmem:[%s2617_s23 + $0xe0] sm:$0xff]  ;;  %v1515_v7 = vmax.f32 %v1950_v58, 0.0  ;;  %v1262_v8 = vand.u32 2147483647, %v1134_v59  ;;  %v1135_v9 = vsub.f32 %v623_v54, %v1007_v60  ;;  %v371_v11 = vld [vmem:[%s2602_s12 + $0xe8] sm:$0xff]  ;;  %v626_v22 = vsub.f32 %v370_v63, %v498_v4 }
  0xc1   : > { %v882_v6 = vld [vmem:[%s2621_s7 + $0xe0] sm:$0xff]  ;;  %v499_v12 = vld [vmem:[%s2610_s13 + $0xe8] sm:$0xff]  ;;  %v1516_v13 = vmax.f32 %v1951_v0, 0.0  ;;  %v1952_v14 = vadd.f32 -0.5, %v1261_v1  ;;  %v1136_v15 = vsub.f32 %v624_v2, %v1008_v3  ;;  %v1009_v16 = vsub.f32 %v753_v61, %v881_v62  ;;  %v372_v19 = vld [vmem:[%s2602_s12 + $0xf0] sm:$0xff] }
  0xc2   : > { %v755_v17 = vld [vmem:[%s2617_s23 + $0xe8] sm:$0xff]  ;;  %1643 = vst [vmem:[%s2663_s25 + $0xa8] sm:$0xff] %v1515_v7  ;;  %v1953_v20 = vadd.f32 -0.5, %v1262_v8  ;;  %v1263_v21 = vand.u32 2147483647, %v1135_v9  ;;  %v1010_v23 = vsub.f32 %v754_v5, %v882_v6  ;;  %v500_v24 = vld [vmem:[%s2610_s13 + $0xf0] sm:$0xff]  ;;  %v627_v30 = vsub.f32 %v371_v11, %v499_v12 }
  0xc3   : > { %v883_v18 = vld [vmem:[%s2621_s7 + $0xe8] sm:$0xff]  ;;  %v756_v25 = vld [vmem:[%s2617_s23 + $0xf0] sm:$0xff]  ;;  %1644 = vst [vmem:[%s2663_s25 + $0xb0] sm:$0xff] %v1516_v13  ;;  %v1517_v27 = vmax.f32 %v1952_v14, 0.0  ;;  %v1264_v28 = vand.u32 2147483647, %v1136_v15  ;;  %v1137_v29 = vsub.f32 %v625_v10, %v1009_v16  ;;  %v628_v42 = vsub.f32 %v372_v19, %v500_v24 }
  0xc4   : > { %v884_v26 = vld [vmem:[%s2621_s7 + $0xf0] sm:$0xff]  ;;  %v373_v31 = vld [vmem:[%s2602_s12 + $0xf8] sm:$0xff]  ;;  %v1518_v33 = vmax.f32 %v1953_v20, 0.0  ;;  %v1954_v34 = vadd.f32 -0.5, %v1263_v21  ;;  %v1138_v35 = vsub.f32 %v626_v22, %v1010_v23  ;;  %v1011_v36 = vsub.f32 %v755_v17, %v883_v18  ;;  %v374_v39 = vld [vmem:[%s2602_s12 + $0x100] sm:$0xff] }
  0xc5   : > { %v501_v32 = vld [vmem:[%s2610_s13 + $0xf8] sm:$0xff]  ;;  %1645 = vst [vmem:[%s2663_s25 + $0xb8] sm:$0xff] %v1517_v27  ;;  %v1955_v40 = vadd.f32 -0.5, %v1264_v28  ;;  %v1265_v41 = vand.u32 2147483647, %v1137_v29  ;;  %v1012_v43 = vsub.f32 %v756_v25, %v884_v26  ;;  %v502_v44 = vld [vmem:[%s2610_s13 + $0x100] sm:$0xff] }
  0xc6   : > { %v757_v37 = vld [vmem:[%s2617_s23 + $0xf8] sm:$0xff]  ;;  %v758_v45 = vld [vmem:[%s2617_s23 + $0x100] sm:$0xff]  ;;  %1646 = vst [vmem:[%s2663_s25 + $0xc0] sm:$0xff] %v1518_v33  ;;  %v1519_v47 = vmax.f32 %v1954_v34, 0.0  ;;  %v1266_v48 = vand.u32 2147483647, %v1138_v35  ;;  %v1139_v49 = vsub.f32 %v627_v30, %v1011_v36  ;;  %v629_v50 = vsub.f32 %v373_v31, %v501_v32 }
  0xc7   : > { %v885_v38 = vld [vmem:[%s2621_s7 + $0xf8] sm:$0xff]  ;;  %v886_v46 = vld [vmem:[%s2621_s7 + $0x100] sm:$0xff]  ;;  %v375_v51 = vld [vmem:[%s2602_s12 + $0x108] sm:$0xff]  ;;  %v1520_v53 = vmax.f32 %v1955_v40, 0.0  ;;  %v1956_v54 = vadd.f32 -0.5, %v1265_v41  ;;  %v1140_v55 = vsub.f32 %v628_v42, %v1012_v43  ;;  %v630_v62 = vsub.f32 %v374_v39, %v502_v44 }
  0xc8   : > { %v503_v52 = vld [vmem:[%s2610_s13 + $0x108] sm:$0xff]  ;;  %v1013_v56 = vsub.f32 %v757_v37, %v885_v38  ;;  %v376_v59 = vld [vmem:[%s2602_s12 + $0x110] sm:$0xff]  ;;  %1647 = vst [vmem:[%s2663_s25 + $0xc8] sm:$0xff] %v1519_v47  ;;  %v1957_v60 = vadd.f32 -0.5, %v1266_v48  ;;  %v1267_v61 = vand.u32 2147483647, %v1139_v49  ;;  %v1014_v63 = vsub.f32 %v758_v45, %v886_v46 }
  0xc9   : > { %v759_v57 = vld [vmem:[%s2617_s23 + $0x108] sm:$0xff]  ;;  %v504_v0 = vld [vmem:[%s2610_s13 + $0x110] sm:$0xff]  ;;  %1648 = vst [vmem:[%s2663_s25 + $0xd0] sm:$0xff] %v1520_v53  ;;  %v1521_v3 = vmax.f32 %v1956_v54, 0.0  ;;  %v1268_v4 = vand.u32 2147483647, %v1140_v55  ;;  %v631_v6 = vsub.f32 %v375_v51, %v503_v52 }
  0xca   : > { %v887_v58 = vld [vmem:[%s2621_s7 + $0x108] sm:$0xff]  ;;  %v760_v1 = vld [vmem:[%s2617_s23 + $0x110] sm:$0xff]  ;;  %v1141_v5 = vsub.f32 %v629_v50, %v1013_v56  ;;  %v377_v7 = vld [vmem:[%s2602_s12 + $0x118] sm:$0xff]  ;;  %v1522_v9 = vmax.f32 %v1957_v60, 0.0  ;;  %v1958_v10 = vadd.f32 -0.5, %v1267_v61  ;;  %v1142_v11 = vsub.f32 %v630_v62, %v1014_v63 }
  0xcb   : > { %v888_v2 = vld [vmem:[%s2621_s7 + $0x110] sm:$0xff]  ;;  %v505_v8 = vld [vmem:[%s2610_s13 + $0x118] sm:$0xff]  ;;  %v1015_v12 = vsub.f32 %v759_v57, %v887_v58  ;;  %v378_v15 = vld [vmem:[%s2602_s12 + $0x120] sm:$0xff]  ;;  %1649 = vst [vmem:[%s2663_s25 + $0xd8] sm:$0xff] %v1521_v3  ;;  %v1959_v16 = vadd.f32 -0.5, %v1268_v4  ;;  %v632_v18 = vsub.f32 %v376_v59, %v504_v0 }
  0xcc   : > { %v761_v13 = vld [vmem:[%s2617_s23 + $0x118] sm:$0xff]  ;;  %v1269_v17 = vand.u32 2147483647, %v1141_v5  ;;  %v1016_v19 = vsub.f32 %v760_v1, %v888_v2  ;;  %v506_v20 = vld [vmem:[%s2610_s13 + $0x120] sm:$0xff]  ;;  %1650 = vst [vmem:[%s2663_s25 + $0xe0] sm:$0xff] %v1522_v9  ;;  %v1523_v23 = vmax.f32 %v1958_v10, 0.0  ;;  %v633_v26 = vsub.f32 %v377_v7, %v505_v8 }
  0xcd   : > { %v889_v14 = vld [vmem:[%s2621_s7 + $0x118] sm:$0xff]  ;;  %v762_v21 = vld [vmem:[%s2617_s23 + $0x120] sm:$0xff]  ;;  %v1270_v24 = vand.u32 2147483647, %v1142_v11  ;;  %v1143_v25 = vsub.f32 %v631_v6, %v1015_v12  ;;  %v379_v27 = vld [vmem:[%s2602_s12 + $0x128] sm:$0xff]  ;;  %v1524_v29 = vmax.f32 %v1959_v16, 0.0  ;;  %v634_v38 = vsub.f32 %v378_v15, %v506_v20 }
  0xce   : > { %v890_v22 = vld [vmem:[%s2621_s7 + $0x120] sm:$0xff]  ;;  %v507_v28 = vld [vmem:[%s2610_s13 + $0x128] sm:$0xff]  ;;  %v1960_v30 = vadd.f32 -0.5, %v1269_v17  ;;  %v1144_v31 = vsub.f32 %v632_v18, %v1016_v19  ;;  %v1017_v32 = vsub.f32 %v761_v13, %v889_v14  ;;  %v380_v35 = vld [vmem:[%s2602_s12 + $0x130] sm:$0xff]  ;;  %1651 = vst [vmem:[%s2663_s25 + $0xe8] sm:$0xff] %v1523_v23 }
  0xcf   : > { %v763_v33 = vld [vmem:[%s2617_s23 + $0x128] sm:$0xff]  ;;  %v1961_v36 = vadd.f32 -0.5, %v1270_v24  ;;  %v1271_v37 = vand.u32 2147483647, %v1143_v25  ;;  %v1018_v39 = vsub.f32 %v762_v21, %v890_v22  ;;  %v508_v40 = vld [vmem:[%s2610_s13 + $0x130] sm:$0xff]  ;;  %1652 = vst [vmem:[%s2663_s25 + $0xf0] sm:$0xff] %v1524_v29  ;;  %v635_v46 = vsub.f32 %v379_v27, %v507_v28 }
  0xd0   : > { %v891_v34 = vld [vmem:[%s2621_s7 + $0x128] sm:$0xff]  ;;  %v764_v41 = vld [vmem:[%s2617_s23 + $0x130] sm:$0xff]  ;;  %v1525_v43 = vmax.f32 %v1960_v30, 0.0  ;;  %v1272_v44 = vand.u32 2147483647, %v1144_v31  ;;  %v1145_v45 = vsub.f32 %v633_v26, %v1017_v32  ;;  %v381_v47 = vld [vmem:[%s2602_s12 + $0x138] sm:$0xff]  ;;  %v636_v58 = vsub.f32 %v380_v35, %v508_v40 }
  0xd1   : > { %v892_v42 = vld [vmem:[%s2621_s7 + $0x130] sm:$0xff]  ;;  %v509_v48 = vld [vmem:[%s2610_s13 + $0x138] sm:$0xff]  ;;  %v1526_v49 = vmax.f32 %v1961_v36, 0.0  ;;  %v1962_v50 = vadd.f32 -0.5, %v1271_v37  ;;  %v1146_v51 = vsub.f32 %v634_v38, %v1018_v39  ;;  %v1019_v52 = vsub.f32 %v763_v33, %v891_v34  ;;  %v382_v55 = vld [vmem:[%s2602_s12 + $0x140] sm:$0xff] }
  0xd2   : > { %v765_v53 = vld [vmem:[%s2617_s23 + $0x138] sm:$0xff]  ;;  %1653 = vst [vmem:[%s2663_s25 + $0xf8] sm:$0xff] %v1525_v43  ;;  %v1963_v56 = vadd.f32 -0.5, %v1272_v44  ;;  %v1273_v57 = vand.u32 2147483647, %v1145_v45  ;;  %v1020_v59 = vsub.f32 %v764_v41, %v892_v42  ;;  %v510_v60 = vld [vmem:[%s2610_s13 + $0x140] sm:$0xff]  ;;  %v637_v2 = vsub.f32 %v381_v47, %v509_v48 }
  0xd3   : > { %v893_v54 = vld [vmem:[%s2621_s7 + $0x138] sm:$0xff]  ;;  %v766_v61 = vld [vmem:[%s2617_s23 + $0x140] sm:$0xff]  ;;  %1654 = vst [vmem:[%s2663_s25 + $0x100] sm:$0xff] %v1526_v49  ;;  %v1527_v63 = vmax.f32 %v1962_v50, 0.0  ;;  %v1274_v0 = vand.u32 2147483647, %v1146_v51  ;;  %v1147_v1 = vsub.f32 %v635_v46, %v1019_v52  ;;  %v638_v14 = vsub.f32 %v382_v55, %v510_v60 }
  0xd4   : > { %v894_v62 = vld [vmem:[%s2621_s7 + $0x140] sm:$0xff]  ;;  %v383_v3 = vld [vmem:[%s2602_s12 + $0x148] sm:$0xff]  ;;  %v1528_v5 = vmax.f32 %v1963_v56, 0.0  ;;  %v1964_v6 = vadd.f32 -0.5, %v1273_v57  ;;  %v1148_v7 = vsub.f32 %v636_v58, %v1020_v59  ;;  %v1021_v8 = vsub.f32 %v765_v53, %v893_v54  ;;  %v384_v11 = vld [vmem:[%s2602_s12 + $0x150] sm:$0xff] }
  0xd5   : > { %v511_v4 = vld [vmem:[%s2610_s13 + $0x148] sm:$0xff]  ;;  %1655 = vst [vmem:[%s2663_s25 + $0x108] sm:$0xff] %v1527_v63  ;;  %v1965_v12 = vadd.f32 -0.5, %v1274_v0  ;;  %v1275_v13 = vand.u32 2147483647, %v1147_v1  ;;  %v1022_v15 = vsub.f32 %v766_v61, %v894_v62  ;;  %v512_v16 = vld [vmem:[%s2610_s13 + $0x150] sm:$0xff] }
  0xd6   : > { %v767_v9 = vld [vmem:[%s2617_s23 + $0x148] sm:$0xff]  ;;  %v768_v17 = vld [vmem:[%s2617_s23 + $0x150] sm:$0xff]  ;;  %1656 = vst [vmem:[%s2663_s25 + $0x110] sm:$0xff] %v1528_v5  ;;  %v1529_v19 = vmax.f32 %v1964_v6, 0.0  ;;  %v1276_v20 = vand.u32 2147483647, %v1148_v7  ;;  %v1149_v21 = vsub.f32 %v637_v2, %v1021_v8  ;;  %v639_v22 = vsub.f32 %v383_v3, %v511_v4 }
  0xd7   : > { %v895_v10 = vld [vmem:[%s2621_s7 + $0x148] sm:$0xff]  ;;  %v896_v18 = vld [vmem:[%s2621_s7 + $0x150] sm:$0xff]  ;;  %v385_v23 = vld [vmem:[%s2602_s12 + $0x158] sm:$0xff]  ;;  %v1530_v25 = vmax.f32 %v1965_v12, 0.0  ;;  %v1966_v26 = vadd.f32 -0.5, %v1275_v13  ;;  %v1150_v27 = vsub.f32 %v638_v14, %v1022_v15  ;;  %v640_v34 = vsub.f32 %v384_v11, %v512_v16 }
  0xd8   : > { %v513_v24 = vld [vmem:[%s2610_s13 + $0x158] sm:$0xff]  ;;  %v1023_v28 = vsub.f32 %v767_v9, %v895_v10  ;;  %v386_v31 = vld [vmem:[%s2602_s12 + $0x160] sm:$0xff]  ;;  %1657 = vst [vmem:[%s2663_s25 + $0x118] sm:$0xff] %v1529_v19  ;;  %v1967_v32 = vadd.f32 -0.5, %v1276_v20  ;;  %v1277_v33 = vand.u32 2147483647, %v1149_v21  ;;  %v1024_v35 = vsub.f32 %v768_v17, %v896_v18 }
  0xd9   : > { %v769_v29 = vld [vmem:[%s2617_s23 + $0x158] sm:$0xff]  ;;  %v514_v36 = vld [vmem:[%s2610_s13 + $0x160] sm:$0xff]  ;;  %1658 = vst [vmem:[%s2663_s25 + $0x120] sm:$0xff] %v1530_v25  ;;  %v1531_v39 = vmax.f32 %v1966_v26, 0.0  ;;  %v1278_v40 = vand.u32 2147483647, %v1150_v27  ;;  %v641_v42 = vsub.f32 %v385_v23, %v513_v24 }
  0xda   : > { %v897_v30 = vld [vmem:[%s2621_s7 + $0x158] sm:$0xff]  ;;  %v770_v37 = vld [vmem:[%s2617_s23 + $0x160] sm:$0xff]  ;;  %v1151_v41 = vsub.f32 %v639_v22, %v1023_v28  ;;  %v387_v43 = vld [vmem:[%s2602_s12 + $0x168] sm:$0xff]  ;;  %v1532_v45 = vmax.f32 %v1967_v32, 0.0  ;;  %v1968_v46 = vadd.f32 -0.5, %v1277_v33  ;;  %v1152_v47 = vsub.f32 %v640_v34, %v1024_v35 }
  0xdb   : > { %v898_v38 = vld [vmem:[%s2621_s7 + $0x160] sm:$0xff]  ;;  %v515_v44 = vld [vmem:[%s2610_s13 + $0x168] sm:$0xff]  ;;  %v1025_v48 = vsub.f32 %v769_v29, %v897_v30  ;;  %v388_v51 = vld [vmem:[%s2602_s12 + $0x170] sm:$0xff]  ;;  %1659 = vst [vmem:[%s2663_s25 + $0x128] sm:$0xff] %v1531_v39  ;;  %v1969_v52 = vadd.f32 -0.5, %v1278_v40  ;;  %v642_v54 = vsub.f32 %v386_v31, %v514_v36 }
  0xdc   : > { %v771_v49 = vld [vmem:[%s2617_s23 + $0x168] sm:$0xff]  ;;  %v1279_v53 = vand.u32 2147483647, %v1151_v41  ;;  %v1026_v55 = vsub.f32 %v770_v37, %v898_v38  ;;  %v516_v56 = vld [vmem:[%s2610_s13 + $0x170] sm:$0xff]  ;;  %1660 = vst [vmem:[%s2663_s25 + $0x130] sm:$0xff] %v1532_v45  ;;  %v1533_v59 = vmax.f32 %v1968_v46, 0.0  ;;  %v643_v62 = vsub.f32 %v387_v43, %v515_v44 }
  0xdd   : > { %v899_v50 = vld [vmem:[%s2621_s7 + $0x168] sm:$0xff]  ;;  %v772_v57 = vld [vmem:[%s2617_s23 + $0x170] sm:$0xff]  ;;  %v1280_v60 = vand.u32 2147483647, %v1152_v47  ;;  %v1153_v61 = vsub.f32 %v641_v42, %v1025_v48  ;;  %v389_v63 = vld [vmem:[%s2602_s12 + $0x178] sm:$0xff]  ;;  %v1534_v1 = vmax.f32 %v1969_v52, 0.0  ;;  %v644_v10 = vsub.f32 %v388_v51, %v516_v56 }
  0xde   : > { %v900_v58 = vld [vmem:[%s2621_s7 + $0x170] sm:$0xff]  ;;  %v517_v0 = vld [vmem:[%s2610_s13 + $0x178] sm:$0xff]  ;;  %v1970_v2 = vadd.f32 -0.5, %v1279_v53  ;;  %v1154_v3 = vsub.f32 %v642_v54, %v1026_v55  ;;  %v1027_v4 = vsub.f32 %v771_v49, %v899_v50  ;;  %v390_v7 = vld [vmem:[%s2602_s12 + $0x180] sm:$0xff]  ;;  %1661 = vst [vmem:[%s2663_s25 + $0x138] sm:$0xff] %v1533_v59 }
  0xdf   : > { %v773_v5 = vld [vmem:[%s2617_s23 + $0x178] sm:$0xff]  ;;  %v1971_v8 = vadd.f32 -0.5, %v1280_v60  ;;  %v1281_v9 = vand.u32 2147483647, %v1153_v61  ;;  %v1028_v11 = vsub.f32 %v772_v57, %v900_v58  ;;  %v518_v12 = vld [vmem:[%s2610_s13 + $0x180] sm:$0xff]  ;;  %1662 = vst [vmem:[%s2663_s25 + $0x140] sm:$0xff] %v1534_v1  ;;  %v645_v18 = vsub.f32 %v389_v63, %v517_v0 }
  0xe0   : > { %v901_v6 = vld [vmem:[%s2621_s7 + $0x178] sm:$0xff]  ;;  %v774_v13 = vld [vmem:[%s2617_s23 + $0x180] sm:$0xff]  ;;  %v1535_v15 = vmax.f32 %v1970_v2, 0.0  ;;  %v1282_v16 = vand.u32 2147483647, %v1154_v3  ;;  %v1155_v17 = vsub.f32 %v643_v62, %v1027_v4  ;;  %v391_v19 = vld [vmem:[%s2602_s12 + $0x188] sm:$0xff]  ;;  %v646_v30 = vsub.f32 %v390_v7, %v518_v12 }
  0xe1   : > { %v902_v14 = vld [vmem:[%s2621_s7 + $0x180] sm:$0xff]  ;;  %v519_v20 = vld [vmem:[%s2610_s13 + $0x188] sm:$0xff]  ;;  %v1536_v21 = vmax.f32 %v1971_v8, 0.0  ;;  %v1972_v22 = vadd.f32 -0.5, %v1281_v9  ;;  %v1156_v23 = vsub.f32 %v644_v10, %v1028_v11  ;;  %v1029_v24 = vsub.f32 %v773_v5, %v901_v6  ;;  %v392_v27 = vld [vmem:[%s2602_s12 + $0x190] sm:$0xff] }
  0xe2   : > { %v775_v25 = vld [vmem:[%s2617_s23 + $0x188] sm:$0xff]  ;;  %1663 = vst [vmem:[%s2663_s25 + $0x148] sm:$0xff] %v1535_v15  ;;  %v1973_v28 = vadd.f32 -0.5, %v1282_v16  ;;  %v1283_v29 = vand.u32 2147483647, %v1155_v17  ;;  %v1030_v31 = vsub.f32 %v774_v13, %v902_v14  ;;  %v520_v32 = vld [vmem:[%s2610_s13 + $0x190] sm:$0xff]  ;;  %v647_v38 = vsub.f32 %v391_v19, %v519_v20 }
  0xe3   : > { %v903_v26 = vld [vmem:[%s2621_s7 + $0x188] sm:$0xff]  ;;  %v776_v33 = vld [vmem:[%s2617_s23 + $0x190] sm:$0xff]  ;;  %1664 = vst [vmem:[%s2663_s25 + $0x150] sm:$0xff] %v1536_v21  ;;  %v1537_v35 = vmax.f32 %v1972_v22, 0.0  ;;  %v1284_v36 = vand.u32 2147483647, %v1156_v23  ;;  %v1157_v37 = vsub.f32 %v645_v18, %v1029_v24  ;;  %v648_v50 = vsub.f32 %v392_v27, %v520_v32 }
  0xe4   : > { %v904_v34 = vld [vmem:[%s2621_s7 + $0x190] sm:$0xff]  ;;  %v393_v39 = vld [vmem:[%s2602_s12 + $0x198] sm:$0xff]  ;;  %v1538_v41 = vmax.f32 %v1973_v28, 0.0  ;;  %v1974_v42 = vadd.f32 -0.5, %v1283_v29  ;;  %v1158_v43 = vsub.f32 %v646_v30, %v1030_v31  ;;  %v1031_v44 = vsub.f32 %v775_v25, %v903_v26  ;;  %v394_v47 = vld [vmem:[%s2602_s12 + $0x1a0] sm:$0xff] }
  0xe5   : > { %v521_v40 = vld [vmem:[%s2610_s13 + $0x198] sm:$0xff]  ;;  %1665 = vst [vmem:[%s2663_s25 + $0x158] sm:$0xff] %v1537_v35  ;;  %v1975_v48 = vadd.f32 -0.5, %v1284_v36  ;;  %v1285_v49 = vand.u32 2147483647, %v1157_v37  ;;  %v1032_v51 = vsub.f32 %v776_v33, %v904_v34  ;;  %v522_v52 = vld [vmem:[%s2610_s13 + $0x1a0] sm:$0xff] }
  0xe6   : > { %v777_v45 = vld [vmem:[%s2617_s23 + $0x198] sm:$0xff]  ;;  %v778_v53 = vld [vmem:[%s2617_s23 + $0x1a0] sm:$0xff]  ;;  %1666 = vst [vmem:[%s2663_s25 + $0x160] sm:$0xff] %v1538_v41  ;;  %v1539_v55 = vmax.f32 %v1974_v42, 0.0  ;;  %v1286_v56 = vand.u32 2147483647, %v1158_v43  ;;  %v1159_v57 = vsub.f32 %v647_v38, %v1031_v44  ;;  %v649_v58 = vsub.f32 %v393_v39, %v521_v40 }
  0xe7   : > { %v905_v46 = vld [vmem:[%s2621_s7 + $0x198] sm:$0xff]  ;;  %v906_v54 = vld [vmem:[%s2621_s7 + $0x1a0] sm:$0xff]  ;;  %v395_v59 = vld [vmem:[%s2602_s12 + $0x1a8] sm:$0xff]  ;;  %v1540_v61 = vmax.f32 %v1975_v48, 0.0  ;;  %v1976_v62 = vadd.f32 -0.5, %v1285_v49  ;;  %v1160_v63 = vsub.f32 %v648_v50, %v1032_v51  ;;  %v650_v6 = vsub.f32 %v394_v47, %v522_v52 }
  0xe8   : > { %v523_v60 = vld [vmem:[%s2610_s13 + $0x1a8] sm:$0xff]  ;;  %v1033_v0 = vsub.f32 %v777_v45, %v905_v46  ;;  %v396_v3 = vld [vmem:[%s2602_s12 + $0x1b0] sm:$0xff]  ;;  %1667 = vst [vmem:[%s2663_s25 + $0x168] sm:$0xff] %v1539_v55  ;;  %v1977_v4 = vadd.f32 -0.5, %v1286_v56  ;;  %v1287_v5 = vand.u32 2147483647, %v1159_v57  ;;  %v1034_v7 = vsub.f32 %v778_v53, %v906_v54 }
  0xe9   : > { %v779_v1 = vld [vmem:[%s2617_s23 + $0x1a8] sm:$0xff]  ;;  %v524_v8 = vld [vmem:[%s2610_s13 + $0x1b0] sm:$0xff]  ;;  %1668 = vst [vmem:[%s2663_s25 + $0x170] sm:$0xff] %v1540_v61  ;;  %v1541_v11 = vmax.f32 %v1976_v62, 0.0  ;;  %v1288_v12 = vand.u32 2147483647, %v1160_v63  ;;  %v651_v14 = vsub.f32 %v395_v59, %v523_v60 }
  0xea   : > { %v907_v2 = vld [vmem:[%s2621_s7 + $0x1a8] sm:$0xff]  ;;  %v780_v9 = vld [vmem:[%s2617_s23 + $0x1b0] sm:$0xff]  ;;  %v1161_v13 = vsub.f32 %v649_v58, %v1033_v0  ;;  %v397_v15 = vld [vmem:[%s2602_s12 + $0x1b8] sm:$0xff]  ;;  %v1542_v17 = vmax.f32 %v1977_v4, 0.0  ;;  %v1978_v18 = vadd.f32 -0.5, %v1287_v5  ;;  %v1162_v19 = vsub.f32 %v650_v6, %v1034_v7 }
  0xeb   : > { %v908_v10 = vld [vmem:[%s2621_s7 + $0x1b0] sm:$0xff]  ;;  %v525_v16 = vld [vmem:[%s2610_s13 + $0x1b8] sm:$0xff]  ;;  %v1035_v20 = vsub.f32 %v779_v1, %v907_v2  ;;  %v398_v23 = vld [vmem:[%s2602_s12 + $0x1c0] sm:$0xff]  ;;  %1669 = vst [vmem:[%s2663_s25 + $0x178] sm:$0xff] %v1541_v11  ;;  %v1979_v24 = vadd.f32 -0.5, %v1288_v12  ;;  %v652_v26 = vsub.f32 %v396_v3, %v524_v8 }
  0xec   : > { %v781_v21 = vld [vmem:[%s2617_s23 + $0x1b8] sm:$0xff]  ;;  %v1289_v25 = vand.u32 2147483647, %v1161_v13  ;;  %v1036_v27 = vsub.f32 %v780_v9, %v908_v10  ;;  %v526_v28 = vld [vmem:[%s2610_s13 + $0x1c0] sm:$0xff]  ;;  %1670 = vst [vmem:[%s2663_s25 + $0x180] sm:$0xff] %v1542_v17  ;;  %v1543_v31 = vmax.f32 %v1978_v18, 0.0  ;;  %v653_v34 = vsub.f32 %v397_v15, %v525_v16 }
  0xed   : > { %v909_v22 = vld [vmem:[%s2621_s7 + $0x1b8] sm:$0xff]  ;;  %v782_v29 = vld [vmem:[%s2617_s23 + $0x1c0] sm:$0xff]  ;;  %v1290_v32 = vand.u32 2147483647, %v1162_v19  ;;  %v1163_v33 = vsub.f32 %v651_v14, %v1035_v20  ;;  %v399_v35 = vld [vmem:[%s2602_s12 + $0x1c8] sm:$0xff]  ;;  %v1544_v37 = vmax.f32 %v1979_v24, 0.0  ;;  %v654_v46 = vsub.f32 %v398_v23, %v526_v28 }
  0xee   : > { %v910_v30 = vld [vmem:[%s2621_s7 + $0x1c0] sm:$0xff]  ;;  %v527_v36 = vld [vmem:[%s2610_s13 + $0x1c8] sm:$0xff]  ;;  %v1980_v38 = vadd.f32 -0.5, %v1289_v25  ;;  %v1164_v39 = vsub.f32 %v652_v26, %v1036_v27  ;;  %v1037_v40 = vsub.f32 %v781_v21, %v909_v22  ;;  %v400_v43 = vld [vmem:[%s2602_s12 + $0x1d0] sm:$0xff]  ;;  %1671 = vst [vmem:[%s2663_s25 + $0x188] sm:$0xff] %v1543_v31 }
  0xef   : > { %v783_v41 = vld [vmem:[%s2617_s23 + $0x1c8] sm:$0xff]  ;;  %v1981_v44 = vadd.f32 -0.5, %v1290_v32  ;;  %v1291_v45 = vand.u32 2147483647, %v1163_v33  ;;  %v1038_v47 = vsub.f32 %v782_v29, %v910_v30  ;;  %v528_v48 = vld [vmem:[%s2610_s13 + $0x1d0] sm:$0xff]  ;;  %1672 = vst [vmem:[%s2663_s25 + $0x190] sm:$0xff] %v1544_v37  ;;  %v655_v54 = vsub.f32 %v399_v35, %v527_v36 }
  0xf0   : > { %v911_v42 = vld [vmem:[%s2621_s7 + $0x1c8] sm:$0xff]  ;;  %v784_v49 = vld [vmem:[%s2617_s23 + $0x1d0] sm:$0xff]  ;;  %v1545_v51 = vmax.f32 %v1980_v38, 0.0  ;;  %v1292_v52 = vand.u32 2147483647, %v1164_v39  ;;  %v1165_v53 = vsub.f32 %v653_v34, %v1037_v40  ;;  %v401_v55 = vld [vmem:[%s2602_s12 + $0x1d8] sm:$0xff]  ;;  %v656_v2 = vsub.f32 %v400_v43, %v528_v48 }
  0xf1   : > { %v912_v50 = vld [vmem:[%s2621_s7 + $0x1d0] sm:$0xff]  ;;  %v529_v56 = vld [vmem:[%s2610_s13 + $0x1d8] sm:$0xff]  ;;  %v1546_v57 = vmax.f32 %v1981_v44, 0.0  ;;  %v1982_v58 = vadd.f32 -0.5, %v1291_v45  ;;  %v1166_v59 = vsub.f32 %v654_v46, %v1038_v47  ;;  %v1039_v60 = vsub.f32 %v783_v41, %v911_v42  ;;  %v402_v63 = vld [vmem:[%s2602_s12 + $0x1e0] sm:$0xff] }
  0xf2   : > { %v785_v61 = vld [vmem:[%s2617_s23 + $0x1d8] sm:$0xff]  ;;  %1673 = vst [vmem:[%s2663_s25 + $0x198] sm:$0xff] %v1545_v51  ;;  %v1983_v0 = vadd.f32 -0.5, %v1292_v52  ;;  %v1293_v1 = vand.u32 2147483647, %v1165_v53  ;;  %v1040_v3 = vsub.f32 %v784_v49, %v912_v50  ;;  %v530_v4 = vld [vmem:[%s2610_s13 + $0x1e0] sm:$0xff]  ;;  %v657_v10 = vsub.f32 %v401_v55, %v529_v56 }
  0xf3   : > { %v913_v62 = vld [vmem:[%s2621_s7 + $0x1d8] sm:$0xff]  ;;  %v786_v5 = vld [vmem:[%s2617_s23 + $0x1e0] sm:$0xff]  ;;  %1674 = vst [vmem:[%s2663_s25 + $0x1a0] sm:$0xff] %v1546_v57  ;;  %v1547_v7 = vmax.f32 %v1982_v58, 0.0  ;;  %v1294_v8 = vand.u32 2147483647, %v1166_v59  ;;  %v1167_v9 = vsub.f32 %v655_v54, %v1039_v60  ;;  %v658_v22 = vsub.f32 %v402_v63, %v530_v4 }
  0xf4   : > { %v914_v6 = vld [vmem:[%s2621_s7 + $0x1e0] sm:$0xff]  ;;  %v403_v11 = vld [vmem:[%s2602_s12 + $0x1e8] sm:$0xff]  ;;  %v1548_v13 = vmax.f32 %v1983_v0, 0.0  ;;  %v1984_v14 = vadd.f32 -0.5, %v1293_v1  ;;  %v1168_v15 = vsub.f32 %v656_v2, %v1040_v3  ;;  %v1041_v16 = vsub.f32 %v785_v61, %v913_v62  ;;  %v404_v19 = vld [vmem:[%s2602_s12 + $0x1f0] sm:$0xff] }
  0xf5   : > { %v531_v12 = vld [vmem:[%s2610_s13 + $0x1e8] sm:$0xff]  ;;  %1675 = vst [vmem:[%s2663_s25 + $0x1a8] sm:$0xff] %v1547_v7  ;;  %v1985_v20 = vadd.f32 -0.5, %v1294_v8  ;;  %v1295_v21 = vand.u32 2147483647, %v1167_v9  ;;  %v1042_v23 = vsub.f32 %v786_v5, %v914_v6  ;;  %v532_v24 = vld [vmem:[%s2610_s13 + $0x1f0] sm:$0xff] }
  0xf6   : > { %v787_v17 = vld [vmem:[%s2617_s23 + $0x1e8] sm:$0xff]  ;;  %v788_v25 = vld [vmem:[%s2617_s23 + $0x1f0] sm:$0xff]  ;;  %1676 = vst [vmem:[%s2663_s25 + $0x1b0] sm:$0xff] %v1548_v13  ;;  %v1549_v27 = vmax.f32 %v1984_v14, 0.0  ;;  %v1296_v28 = vand.u32 2147483647, %v1168_v15  ;;  %v1169_v29 = vsub.f32 %v657_v10, %v1041_v16  ;;  %v659_v30 = vsub.f32 %v403_v11, %v531_v12 }
  0xf7   : > { %v915_v18 = vld [vmem:[%s2621_s7 + $0x1e8] sm:$0xff]  ;;  %v916_v26 = vld [vmem:[%s2621_s7 + $0x1f0] sm:$0xff]  ;;  %v405_v31 = vld [vmem:[%s2602_s12 + $0x1f8] sm:$0xff]  ;;  %v1550_v33 = vmax.f32 %v1985_v20, 0.0  ;;  %v1986_v34 = vadd.f32 -0.5, %v1295_v21  ;;  %v1170_v35 = vsub.f32 %v658_v22, %v1042_v23  ;;  %v660_v42 = vsub.f32 %v404_v19, %v532_v24 }
  0xf8   : > { %v533_v32 = vld [vmem:[%s2610_s13 + $0x1f8] sm:$0xff]  ;;  %v1043_v36 = vsub.f32 %v787_v17, %v915_v18  ;;  %v406_v39 = vld [vmem:[%s2602_s12 + $0x200] sm:$0xff]  ;;  %1677 = vst [vmem:[%s2663_s25 + $0x1b8] sm:$0xff] %v1549_v27  ;;  %v1987_v40 = vadd.f32 -0.5, %v1296_v28  ;;  %v1297_v41 = vand.u32 2147483647, %v1169_v29  ;;  %v1044_v43 = vsub.f32 %v788_v25, %v916_v26 }
  0xf9   : > { %v789_v37 = vld [vmem:[%s2617_s23 + $0x1f8] sm:$0xff]  ;;  %v534_v44 = vld [vmem:[%s2610_s13 + $0x200] sm:$0xff]  ;;  %1678 = vst [vmem:[%s2663_s25 + $0x1c0] sm:$0xff] %v1550_v33  ;;  %v1551_v47 = vmax.f32 %v1986_v34, 0.0  ;;  %v1298_v48 = vand.u32 2147483647, %v1170_v35  ;;  %v661_v50 = vsub.f32 %v405_v31, %v533_v32 }
  0xfa   : > { %v917_v38 = vld [vmem:[%s2621_s7 + $0x1f8] sm:$0xff]  ;;  %v790_v45 = vld [vmem:[%s2617_s23 + $0x200] sm:$0xff]  ;;  %v1171_v49 = vsub.f32 %v659_v30, %v1043_v36  ;;  %v407_v51 = vld [vmem:[%s2602_s12 + $0x208] sm:$0xff]  ;;  %v1552_v53 = vmax.f32 %v1987_v40, 0.0  ;;  %v1988_v54 = vadd.f32 -0.5, %v1297_v41  ;;  %v1172_v55 = vsub.f32 %v660_v42, %v1044_v43 }
  0xfb   : > { %v918_v46 = vld [vmem:[%s2621_s7 + $0x200] sm:$0xff]  ;;  %v535_v52 = vld [vmem:[%s2610_s13 + $0x208] sm:$0xff]  ;;  %v1045_v56 = vsub.f32 %v789_v37, %v917_v38  ;;  %v408_v59 = vld [vmem:[%s2602_s12 + $0x210] sm:$0xff]  ;;  %1679 = vst [vmem:[%s2663_s25 + $0x1c8] sm:$0xff] %v1551_v47  ;;  %v1989_v60 = vadd.f32 -0.5, %v1298_v48  ;;  %v662_v62 = vsub.f32 %v406_v39, %v534_v44 }
  0xfc   : > { %v791_v57 = vld [vmem:[%s2617_s23 + $0x208] sm:$0xff]  ;;  %v1299_v61 = vand.u32 2147483647, %v1171_v49  ;;  %v1046_v63 = vsub.f32 %v790_v45, %v918_v46  ;;  %v536_v0 = vld [vmem:[%s2610_s13 + $0x210] sm:$0xff]  ;;  %1680 = vst [vmem:[%s2663_s25 + $0x1d0] sm:$0xff] %v1552_v53  ;;  %v1553_v3 = vmax.f32 %v1988_v54, 0.0  ;;  %v663_v6 = vsub.f32 %v407_v51, %v535_v52 }
  0xfd   : > { %v919_v58 = vld [vmem:[%s2621_s7 + $0x208] sm:$0xff]  ;;  %v792_v1 = vld [vmem:[%s2617_s23 + $0x210] sm:$0xff]  ;;  %v1300_v4 = vand.u32 2147483647, %v1172_v55  ;;  %v1173_v5 = vsub.f32 %v661_v50, %v1045_v56  ;;  %v409_v7 = vld [vmem:[%s2602_s12 + $0x218] sm:$0xff]  ;;  %v1554_v9 = vmax.f32 %v1989_v60, 0.0  ;;  %v664_v18 = vsub.f32 %v408_v59, %v536_v0 }
  0xfe   : > { %v920_v2 = vld [vmem:[%s2621_s7 + $0x210] sm:$0xff]  ;;  %v537_v8 = vld [vmem:[%s2610_s13 + $0x218] sm:$0xff]  ;;  %v1990_v10 = vadd.f32 -0.5, %v1299_v61  ;;  %v1174_v11 = vsub.f32 %v662_v62, %v1046_v63  ;;  %v1047_v12 = vsub.f32 %v791_v57, %v919_v58  ;;  %v410_v15 = vld [vmem:[%s2602_s12 + $0x220] sm:$0xff]  ;;  %1681 = vst [vmem:[%s2663_s25 + $0x1d8] sm:$0xff] %v1553_v3 }
  0xff   : > { %v793_v13 = vld [vmem:[%s2617_s23 + $0x218] sm:$0xff]  ;;  %v1991_v16 = vadd.f32 -0.5, %v1300_v4  ;;  %v1301_v17 = vand.u32 2147483647, %v1173_v5  ;;  %v1048_v19 = vsub.f32 %v792_v1, %v920_v2  ;;  %v538_v20 = vld [vmem:[%s2610_s13 + $0x220] sm:$0xff]  ;;  %1682 = vst [vmem:[%s2663_s25 + $0x1e0] sm:$0xff] %v1554_v9  ;;  %v665_v26 = vsub.f32 %v409_v7, %v537_v8 }
 0x100   : > { %v921_v14 = vld [vmem:[%s2621_s7 + $0x218] sm:$0xff]  ;;  %v794_v21 = vld [vmem:[%s2617_s23 + $0x220] sm:$0xff]  ;;  %v1555_v23 = vmax.f32 %v1990_v10, 0.0  ;;  %v1302_v24 = vand.u32 2147483647, %v1174_v11  ;;  %v1175_v25 = vsub.f32 %v663_v6, %v1047_v12  ;;  %v411_v27 = vld [vmem:[%s2602_s12 + $0x228] sm:$0xff]  ;;  %v666_v38 = vsub.f32 %v410_v15, %v538_v20 }
 0x101   : > { %v922_v22 = vld [vmem:[%s2621_s7 + $0x220] sm:$0xff]  ;;  %v539_v28 = vld [vmem:[%s2610_s13 + $0x228] sm:$0xff]  ;;  %v1556_v29 = vmax.f32 %v1991_v16, 0.0  ;;  %v1992_v30 = vadd.f32 -0.5, %v1301_v17  ;;  %v1176_v31 = vsub.f32 %v664_v18, %v1048_v19  ;;  %v1049_v32 = vsub.f32 %v793_v13, %v921_v14  ;;  %v412_v35 = vld [vmem:[%s2602_s12 + $0x230] sm:$0xff] }
 0x102   : > { %v795_v33 = vld [vmem:[%s2617_s23 + $0x228] sm:$0xff]  ;;  %1683 = vst [vmem:[%s2663_s25 + $0x1e8] sm:$0xff] %v1555_v23  ;;  %v1993_v36 = vadd.f32 -0.5, %v1302_v24  ;;  %v1303_v37 = vand.u32 2147483647, %v1175_v25  ;;  %v1050_v39 = vsub.f32 %v794_v21, %v922_v22  ;;  %v540_v40 = vld [vmem:[%s2610_s13 + $0x230] sm:$0xff]  ;;  %v667_v46 = vsub.f32 %v411_v27, %v539_v28 }
 0x103   : > { %v923_v34 = vld [vmem:[%s2621_s7 + $0x228] sm:$0xff]  ;;  %v796_v41 = vld [vmem:[%s2617_s23 + $0x230] sm:$0xff]  ;;  %1684 = vst [vmem:[%s2663_s25 + $0x1f0] sm:$0xff] %v1556_v29  ;;  %v1557_v43 = vmax.f32 %v1992_v30, 0.0  ;;  %v1304_v44 = vand.u32 2147483647, %v1176_v31  ;;  %v1177_v45 = vsub.f32 %v665_v26, %v1049_v32  ;;  %v668_v58 = vsub.f32 %v412_v35, %v540_v40 }
 0x104   : > { %v924_v42 = vld [vmem:[%s2621_s7 + $0x230] sm:$0xff]  ;;  %v413_v47 = vld [vmem:[%s2602_s12 + $0x238] sm:$0xff]  ;;  %v1558_v49 = vmax.f32 %v1993_v36, 0.0  ;;  %v1994_v50 = vadd.f32 -0.5, %v1303_v37  ;;  %v1178_v51 = vsub.f32 %v666_v38, %v1050_v39  ;;  %v1051_v52 = vsub.f32 %v795_v33, %v923_v34  ;;  %v414_v55 = vld [vmem:[%s2602_s12 + $0x240] sm:$0xff] }
 0x105   : > { %v541_v48 = vld [vmem:[%s2610_s13 + $0x238] sm:$0xff]  ;;  %1685 = vst [vmem:[%s2663_s25 + $0x1f8] sm:$0xff] %v1557_v43  ;;  %v1995_v56 = vadd.f32 -0.5, %v1304_v44  ;;  %v1305_v57 = vand.u32 2147483647, %v1177_v45  ;;  %v1052_v59 = vsub.f32 %v796_v41, %v924_v42  ;;  %v542_v60 = vld [vmem:[%s2610_s13 + $0x240] sm:$0xff] }
 0x106   : > { %v797_v53 = vld [vmem:[%s2617_s23 + $0x238] sm:$0xff]  ;;  %v798_v61 = vld [vmem:[%s2617_s23 + $0x240] sm:$0xff]  ;;  %1686 = vst [vmem:[%s2663_s25 + $0x200] sm:$0xff] %v1558_v49  ;;  %v1559_v63 = vmax.f32 %v1994_v50, 0.0  ;;  %v1306_v0 = vand.u32 2147483647, %v1178_v51  ;;  %v1179_v1 = vsub.f32 %v667_v46, %v1051_v52  ;;  %v669_v2 = vsub.f32 %v413_v47, %v541_v48 }
 0x107   : > { %v925_v54 = vld [vmem:[%s2621_s7 + $0x238] sm:$0xff]  ;;  %v926_v62 = vld [vmem:[%s2621_s7 + $0x240] sm:$0xff]  ;;  %v415_v3 = vld [vmem:[%s2602_s12 + $0x248] sm:$0xff]  ;;  %v1560_v5 = vmax.f32 %v1995_v56, 0.0  ;;  %v1996_v6 = vadd.f32 -0.5, %v1305_v57  ;;  %v1180_v7 = vsub.f32 %v668_v58, %v1052_v59  ;;  %v670_v14 = vsub.f32 %v414_v55, %v542_v60 }
 0x108   : > { %v543_v4 = vld [vmem:[%s2610_s13 + $0x248] sm:$0xff]  ;;  %v1053_v8 = vsub.f32 %v797_v53, %v925_v54  ;;  %v416_v11 = vld [vmem:[%s2602_s12 + $0x250] sm:$0xff]  ;;  %1687 = vst [vmem:[%s2663_s25 + $0x208] sm:$0xff] %v1559_v63  ;;  %v1997_v12 = vadd.f32 -0.5, %v1306_v0  ;;  %v1307_v13 = vand.u32 2147483647, %v1179_v1  ;;  %v1054_v15 = vsub.f32 %v798_v61, %v926_v62 }
 0x109   : > { %v799_v9 = vld [vmem:[%s2617_s23 + $0x248] sm:$0xff]  ;;  %v544_v16 = vld [vmem:[%s2610_s13 + $0x250] sm:$0xff]  ;;  %1688 = vst [vmem:[%s2663_s25 + $0x210] sm:$0xff] %v1560_v5  ;;  %v1561_v19 = vmax.f32 %v1996_v6, 0.0  ;;  %v1308_v20 = vand.u32 2147483647, %v1180_v7  ;;  %v671_v22 = vsub.f32 %v415_v3, %v543_v4 }
 0x10a   : > { %v927_v10 = vld [vmem:[%s2621_s7 + $0x248] sm:$0xff]  ;;  %v800_v17 = vld [vmem:[%s2617_s23 + $0x250] sm:$0xff]  ;;  %v1181_v21 = vsub.f32 %v669_v2, %v1053_v8  ;;  %v417_v23 = vld [vmem:[%s2602_s12 + $0x258] sm:$0xff]  ;;  %v1562_v25 = vmax.f32 %v1997_v12, 0.0  ;;  %v1998_v26 = vadd.f32 -0.5, %v1307_v13  ;;  %v1182_v27 = vsub.f32 %v670_v14, %v1054_v15 }
 0x10b   : > { %v928_v18 = vld [vmem:[%s2621_s7 + $0x250] sm:$0xff]  ;;  %v545_v24 = vld [vmem:[%s2610_s13 + $0x258] sm:$0xff]  ;;  %v1055_v28 = vsub.f32 %v799_v9, %v927_v10  ;;  %v418_v31 = vld [vmem:[%s2602_s12 + $0x260] sm:$0xff]  ;;  %1689 = vst [vmem:[%s2663_s25 + $0x218] sm:$0xff] %v1561_v19  ;;  %v1999_v32 = vadd.f32 -0.5, %v1308_v20  ;;  %v672_v34 = vsub.f32 %v416_v11, %v544_v16 }
 0x10c   : > { %v801_v29 = vld [vmem:[%s2617_s23 + $0x258] sm:$0xff]  ;;  %v1309_v33 = vand.u32 2147483647, %v1181_v21  ;;  %v1056_v35 = vsub.f32 %v800_v17, %v928_v18  ;;  %v546_v36 = vld [vmem:[%s2610_s13 + $0x260] sm:$0xff]  ;;  %1690 = vst [vmem:[%s2663_s25 + $0x220] sm:$0xff] %v1562_v25  ;;  %v1563_v39 = vmax.f32 %v1998_v26, 0.0  ;;  %v673_v42 = vsub.f32 %v417_v23, %v545_v24 }
 0x10d   : > { %v929_v30 = vld [vmem:[%s2621_s7 + $0x258] sm:$0xff]  ;;  %v802_v37 = vld [vmem:[%s2617_s23 + $0x260] sm:$0xff]  ;;  %v1310_v40 = vand.u32 2147483647, %v1182_v27  ;;  %v1183_v41 = vsub.f32 %v671_v22, %v1055_v28  ;;  %v419_v43 = vld [vmem:[%s2602_s12 + $0x268] sm:$0xff]  ;;  %v1564_v45 = vmax.f32 %v1999_v32, 0.0  ;;  %v674_v54 = vsub.f32 %v418_v31, %v546_v36 }
 0x10e   : > { %v930_v38 = vld [vmem:[%s2621_s7 + $0x260] sm:$0xff]  ;;  %v547_v44 = vld [vmem:[%s2610_s13 + $0x268] sm:$0xff]  ;;  %v2000_v46 = vadd.f32 -0.5, %v1309_v33  ;;  %v1184_v47 = vsub.f32 %v672_v34, %v1056_v35  ;;  %v1057_v48 = vsub.f32 %v801_v29, %v929_v30  ;;  %v420_v51 = vld [vmem:[%s2602_s12 + $0x270] sm:$0xff]  ;;  %1691 = vst [vmem:[%s2663_s25 + $0x228] sm:$0xff] %v1563_v39 }
 0x10f   : > { %v803_v49 = vld [vmem:[%s2617_s23 + $0x268] sm:$0xff]  ;;  %v2001_v52 = vadd.f32 -0.5, %v1310_v40  ;;  %v1311_v53 = vand.u32 2147483647, %v1183_v41  ;;  %v1058_v55 = vsub.f32 %v802_v37, %v930_v38  ;;  %v548_v56 = vld [vmem:[%s2610_s13 + $0x270] sm:$0xff]  ;;  %1692 = vst [vmem:[%s2663_s25 + $0x230] sm:$0xff] %v1564_v45  ;;  %v675_v62 = vsub.f32 %v419_v43, %v547_v44 }
 0x110   : > { %v931_v50 = vld [vmem:[%s2621_s7 + $0x268] sm:$0xff]  ;;  %v804_v57 = vld [vmem:[%s2617_s23 + $0x270] sm:$0xff]  ;;  %v1565_v59 = vmax.f32 %v2000_v46, 0.0  ;;  %v1312_v60 = vand.u32 2147483647, %v1184_v47  ;;  %v1185_v61 = vsub.f32 %v673_v42, %v1057_v48  ;;  %v421_v63 = vld [vmem:[%s2602_s12 + $0x278] sm:$0xff]  ;;  %v676_v10 = vsub.f32 %v420_v51, %v548_v56 }
 0x111   : > { %v932_v58 = vld [vmem:[%s2621_s7 + $0x270] sm:$0xff]  ;;  %v549_v0 = vld [vmem:[%s2610_s13 + $0x278] sm:$0xff]  ;;  %v1566_v1 = vmax.f32 %v2001_v52, 0.0  ;;  %v2002_v2 = vadd.f32 -0.5, %v1311_v53  ;;  %v1186_v3 = vsub.f32 %v674_v54, %v1058_v55  ;;  %v1059_v4 = vsub.f32 %v803_v49, %v931_v50  ;;  %v422_v7 = vld [vmem:[%s2602_s12 + $0x280] sm:$0xff] }
 0x112   : > { %v805_v5 = vld [vmem:[%s2617_s23 + $0x278] sm:$0xff]  ;;  %1693 = vst [vmem:[%s2663_s25 + $0x238] sm:$0xff] %v1565_v59  ;;  %v2003_v8 = vadd.f32 -0.5, %v1312_v60  ;;  %v1313_v9 = vand.u32 2147483647, %v1185_v61  ;;  %v1060_v11 = vsub.f32 %v804_v57, %v932_v58  ;;  %v550_v12 = vld [vmem:[%s2610_s13 + $0x280] sm:$0xff]  ;;  %v677_v18 = vsub.f32 %v421_v63, %v549_v0 }
 0x113   : > { %v933_v6 = vld [vmem:[%s2621_s7 + $0x278] sm:$0xff]  ;;  %v806_v13 = vld [vmem:[%s2617_s23 + $0x280] sm:$0xff]  ;;  %1694 = vst [vmem:[%s2663_s25 + $0x240] sm:$0xff] %v1566_v1  ;;  %v1567_v15 = vmax.f32 %v2002_v2, 0.0  ;;  %v1314_v16 = vand.u32 2147483647, %v1186_v3  ;;  %v1187_v17 = vsub.f32 %v675_v62, %v1059_v4  ;;  %v678_v30 = vsub.f32 %v422_v7, %v550_v12 }
 0x114   : > { %v934_v14 = vld [vmem:[%s2621_s7 + $0x280] sm:$0xff]  ;;  %v423_v19 = vld [vmem:[%s2602_s12 + $0x288] sm:$0xff]  ;;  %v1568_v21 = vmax.f32 %v2003_v8, 0.0  ;;  %v2004_v22 = vadd.f32 -0.5, %v1313_v9  ;;  %v1188_v23 = vsub.f32 %v676_v10, %v1060_v11  ;;  %v1061_v24 = vsub.f32 %v805_v5, %v933_v6  ;;  %v424_v27 = vld [vmem:[%s2602_s12 + $0x290] sm:$0xff] }
 0x115   : > { %v551_v20 = vld [vmem:[%s2610_s13 + $0x288] sm:$0xff]  ;;  %1695 = vst [vmem:[%s2663_s25 + $0x248] sm:$0xff] %v1567_v15  ;;  %v2005_v28 = vadd.f32 -0.5, %v1314_v16  ;;  %v1315_v29 = vand.u32 2147483647, %v1187_v17  ;;  %v1062_v31 = vsub.f32 %v806_v13, %v934_v14  ;;  %v552_v32 = vld [vmem:[%s2610_s13 + $0x290] sm:$0xff] }
 0x116   : > { %v807_v25 = vld [vmem:[%s2617_s23 + $0x288] sm:$0xff]  ;;  %v808_v33 = vld [vmem:[%s2617_s23 + $0x290] sm:$0xff]  ;;  %1696 = vst [vmem:[%s2663_s25 + $0x250] sm:$0xff] %v1568_v21  ;;  %v1569_v35 = vmax.f32 %v2004_v22, 0.0  ;;  %v1316_v36 = vand.u32 2147483647, %v1188_v23  ;;  %v1189_v37 = vsub.f32 %v677_v18, %v1061_v24  ;;  %v679_v38 = vsub.f32 %v423_v19, %v551_v20 }
 0x117   : > { %v935_v26 = vld [vmem:[%s2621_s7 + $0x288] sm:$0xff]  ;;  %v936_v34 = vld [vmem:[%s2621_s7 + $0x290] sm:$0xff]  ;;  %v425_v39 = vld [vmem:[%s2602_s12 + $0x298] sm:$0xff]  ;;  %v1570_v41 = vmax.f32 %v2005_v28, 0.0  ;;  %v2006_v42 = vadd.f32 -0.5, %v1315_v29  ;;  %v1190_v43 = vsub.f32 %v678_v30, %v1062_v31  ;;  %v680_v50 = vsub.f32 %v424_v27, %v552_v32 }
 0x118   : > { %v553_v40 = vld [vmem:[%s2610_s13 + $0x298] sm:$0xff]  ;;  %v1063_v44 = vsub.f32 %v807_v25, %v935_v26  ;;  %v426_v47 = vld [vmem:[%s2602_s12 + $0x2a0] sm:$0xff]  ;;  %1697 = vst [vmem:[%s2663_s25 + $0x258] sm:$0xff] %v1569_v35  ;;  %v2007_v48 = vadd.f32 -0.5, %v1316_v36  ;;  %v1317_v49 = vand.u32 2147483647, %v1189_v37  ;;  %v1064_v51 = vsub.f32 %v808_v33, %v936_v34 }
 0x119   : > { %v809_v45 = vld [vmem:[%s2617_s23 + $0x298] sm:$0xff]  ;;  %v554_v52 = vld [vmem:[%s2610_s13 + $0x2a0] sm:$0xff]  ;;  %1698 = vst [vmem:[%s2663_s25 + $0x260] sm:$0xff] %v1570_v41  ;;  %v1571_v55 = vmax.f32 %v2006_v42, 0.0  ;;  %v1318_v56 = vand.u32 2147483647, %v1190_v43  ;;  %v681_v58 = vsub.f32 %v425_v39, %v553_v40 }
 0x11a   : > { %v937_v46 = vld [vmem:[%s2621_s7 + $0x298] sm:$0xff]  ;;  %v810_v53 = vld [vmem:[%s2617_s23 + $0x2a0] sm:$0xff]  ;;  %v1191_v57 = vsub.f32 %v679_v38, %v1063_v44  ;;  %v427_v59 = vld [vmem:[%s2602_s12 + $0x2a8] sm:$0xff]  ;;  %v1572_v61 = vmax.f32 %v2007_v48, 0.0  ;;  %v2008_v62 = vadd.f32 -0.5, %v1317_v49  ;;  %v1192_v63 = vsub.f32 %v680_v50, %v1064_v51 }
 0x11b   : > { %v938_v54 = vld [vmem:[%s2621_s7 + $0x2a0] sm:$0xff]  ;;  %v555_v60 = vld [vmem:[%s2610_s13 + $0x2a8] sm:$0xff]  ;;  %v1065_v0 = vsub.f32 %v809_v45, %v937_v46  ;;  %v428_v3 = vld [vmem:[%s2602_s12 + $0x2b0] sm:$0xff]  ;;  %1699 = vst [vmem:[%s2663_s25 + $0x268] sm:$0xff] %v1571_v55  ;;  %v2009_v4 = vadd.f32 -0.5, %v1318_v56  ;;  %v682_v6 = vsub.f32 %v426_v47, %v554_v52 }
 0x11c   : > { %v811_v1 = vld [vmem:[%s2617_s23 + $0x2a8] sm:$0xff]  ;;  %v1319_v5 = vand.u32 2147483647, %v1191_v57  ;;  %v1066_v7 = vsub.f32 %v810_v53, %v938_v54  ;;  %v556_v8 = vld [vmem:[%s2610_s13 + $0x2b0] sm:$0xff]  ;;  %1700 = vst [vmem:[%s2663_s25 + $0x270] sm:$0xff] %v1572_v61  ;;  %v1573_v11 = vmax.f32 %v2008_v62, 0.0  ;;  %v683_v14 = vsub.f32 %v427_v59, %v555_v60 }
 0x11d   : > { %v939_v2 = vld [vmem:[%s2621_s7 + $0x2a8] sm:$0xff]  ;;  %v812_v9 = vld [vmem:[%s2617_s23 + $0x2b0] sm:$0xff]  ;;  %v1320_v12 = vand.u32 2147483647, %v1192_v63  ;;  %v1193_v13 = vsub.f32 %v681_v58, %v1065_v0  ;;  %v429_v15 = vld [vmem:[%s2602_s12 + $0x2b8] sm:$0xff]  ;;  %v1574_v17 = vmax.f32 %v2009_v4, 0.0  ;;  %v684_v26 = vsub.f32 %v428_v3, %v556_v8 }
 0x11e   : > { %v940_v10 = vld [vmem:[%s2621_s7 + $0x2b0] sm:$0xff]  ;;  %v557_v16 = vld [vmem:[%s2610_s13 + $0x2b8] sm:$0xff]  ;;  %v2010_v18 = vadd.f32 -0.5, %v1319_v5  ;;  %v1194_v19 = vsub.f32 %v682_v6, %v1066_v7  ;;  %v1067_v20 = vsub.f32 %v811_v1, %v939_v2  ;;  %v430_v23 = vld [vmem:[%s2602_s12 + $0x2c0] sm:$0xff]  ;;  %1701 = vst [vmem:[%s2663_s25 + $0x278] sm:$0xff] %v1573_v11 }
 0x11f   : > { %v813_v21 = vld [vmem:[%s2617_s23 + $0x2b8] sm:$0xff]  ;;  %v2011_v24 = vadd.f32 -0.5, %v1320_v12  ;;  %v1321_v25 = vand.u32 2147483647, %v1193_v13  ;;  %v1068_v27 = vsub.f32 %v812_v9, %v940_v10  ;;  %v558_v28 = vld [vmem:[%s2610_s13 + $0x2c0] sm:$0xff]  ;;  %1702 = vst [vmem:[%s2663_s25 + $0x280] sm:$0xff] %v1574_v17  ;;  %v685_v34 = vsub.f32 %v429_v15, %v557_v16 }
 0x120   : > { %v941_v22 = vld [vmem:[%s2621_s7 + $0x2b8] sm:$0xff]  ;;  %v814_v29 = vld [vmem:[%s2617_s23 + $0x2c0] sm:$0xff]  ;;  %v1575_v31 = vmax.f32 %v2010_v18, 0.0  ;;  %v1322_v32 = vand.u32 2147483647, %v1194_v19  ;;  %v1195_v33 = vsub.f32 %v683_v14, %v1067_v20  ;;  %v431_v35 = vld [vmem:[%s2602_s12 + $0x2c8] sm:$0xff]  ;;  %v686_v46 = vsub.f32 %v430_v23, %v558_v28 }
 0x121   : > { %v942_v30 = vld [vmem:[%s2621_s7 + $0x2c0] sm:$0xff]  ;;  %v559_v36 = vld [vmem:[%s2610_s13 + $0x2c8] sm:$0xff]  ;;  %v1576_v37 = vmax.f32 %v2011_v24, 0.0  ;;  %v2012_v38 = vadd.f32 -0.5, %v1321_v25  ;;  %v1196_v39 = vsub.f32 %v684_v26, %v1068_v27  ;;  %v1069_v40 = vsub.f32 %v813_v21, %v941_v22  ;;  %v432_v43 = vld [vmem:[%s2602_s12 + $0x2d0] sm:$0xff] }
 0x122   : > { %v815_v41 = vld [vmem:[%s2617_s23 + $0x2c8] sm:$0xff]  ;;  %1703 = vst [vmem:[%s2663_s25 + $0x288] sm:$0xff] %v1575_v31  ;;  %v2013_v44 = vadd.f32 -0.5, %v1322_v32  ;;  %v1323_v45 = vand.u32 2147483647, %v1195_v33  ;;  %v1070_v47 = vsub.f32 %v814_v29, %v942_v30  ;;  %v560_v48 = vld [vmem:[%s2610_s13 + $0x2d0] sm:$0xff]  ;;  %v687_v54 = vsub.f32 %v431_v35, %v559_v36 }
 0x123   : > { %v943_v42 = vld [vmem:[%s2621_s7 + $0x2c8] sm:$0xff]  ;;  %v816_v49 = vld [vmem:[%s2617_s23 + $0x2d0] sm:$0xff]  ;;  %1704 = vst [vmem:[%s2663_s25 + $0x290] sm:$0xff] %v1576_v37  ;;  %v1577_v51 = vmax.f32 %v2012_v38, 0.0  ;;  %v1324_v52 = vand.u32 2147483647, %v1196_v39  ;;  %v1197_v53 = vsub.f32 %v685_v34, %v1069_v40  ;;  %v688_v2 = vsub.f32 %v432_v43, %v560_v48 }
 0x124   : > { %v944_v50 = vld [vmem:[%s2621_s7 + $0x2d0] sm:$0xff]  ;;  %v433_v55 = vld [vmem:[%s2602_s12 + $0x2d8] sm:$0xff]  ;;  %v1578_v57 = vmax.f32 %v2013_v44, 0.0  ;;  %v2014_v58 = vadd.f32 -0.5, %v1323_v45  ;;  %v1198_v59 = vsub.f32 %v686_v46, %v1070_v47  ;;  %v1071_v60 = vsub.f32 %v815_v41, %v943_v42  ;;  %v434_v63 = vld [vmem:[%s2602_s12 + $0x2e0] sm:$0xff] }
 0x125   : > { %v561_v56 = vld [vmem:[%s2610_s13 + $0x2d8] sm:$0xff]  ;;  %1705 = vst [vmem:[%s2663_s25 + $0x298] sm:$0xff] %v1577_v51  ;;  %v2015_v0 = vadd.f32 -0.5, %v1324_v52  ;;  %v1325_v1 = vand.u32 2147483647, %v1197_v53  ;;  %v1072_v3 = vsub.f32 %v816_v49, %v944_v50  ;;  %v562_v4 = vld [vmem:[%s2610_s13 + $0x2e0] sm:$0xff] }
 0x126   : > { %v817_v61 = vld [vmem:[%s2617_s23 + $0x2d8] sm:$0xff]  ;;  %v818_v5 = vld [vmem:[%s2617_s23 + $0x2e0] sm:$0xff]  ;;  %1706 = vst [vmem:[%s2663_s25 + $0x2a0] sm:$0xff] %v1578_v57  ;;  %v1579_v7 = vmax.f32 %v2014_v58, 0.0  ;;  %v1326_v8 = vand.u32 2147483647, %v1198_v59  ;;  %v1199_v9 = vsub.f32 %v687_v54, %v1071_v60  ;;  %v689_v10 = vsub.f32 %v433_v55, %v561_v56 }
 0x127   : > { %v945_v62 = vld [vmem:[%s2621_s7 + $0x2d8] sm:$0xff]  ;;  %v946_v6 = vld [vmem:[%s2621_s7 + $0x2e0] sm:$0xff]  ;;  %v435_v11 = vld [vmem:[%s2602_s12 + $0x2e8] sm:$0xff]  ;;  %v1580_v13 = vmax.f32 %v2015_v0, 0.0  ;;  %v2016_v14 = vadd.f32 -0.5, %v1325_v1  ;;  %v1200_v15 = vsub.f32 %v688_v2, %v1072_v3  ;;  %v690_v22 = vsub.f32 %v434_v63, %v562_v4 }
 0x128   : > { %v563_v12 = vld [vmem:[%s2610_s13 + $0x2e8] sm:$0xff]  ;;  %v1073_v16 = vsub.f32 %v817_v61, %v945_v62  ;;  %v436_v19 = vld [vmem:[%s2602_s12 + $0x2f0] sm:$0xff]  ;;  %1707 = vst [vmem:[%s2663_s25 + $0x2a8] sm:$0xff] %v1579_v7  ;;  %v2017_v20 = vadd.f32 -0.5, %v1326_v8  ;;  %v1327_v21 = vand.u32 2147483647, %v1199_v9  ;;  %v1074_v23 = vsub.f32 %v818_v5, %v946_v6 }
 0x129   : > { %v819_v17 = vld [vmem:[%s2617_s23 + $0x2e8] sm:$0xff]  ;;  %v564_v24 = vld [vmem:[%s2610_s13 + $0x2f0] sm:$0xff]  ;;  %1708 = vst [vmem:[%s2663_s25 + $0x2b0] sm:$0xff] %v1580_v13  ;;  %v1581_v27 = vmax.f32 %v2016_v14, 0.0  ;;  %v1328_v28 = vand.u32 2147483647, %v1200_v15  ;;  %v691_v30 = vsub.f32 %v435_v11, %v563_v12 }
 0x12a   : > { %v947_v18 = vld [vmem:[%s2621_s7 + $0x2e8] sm:$0xff]  ;;  %v820_v25 = vld [vmem:[%s2617_s23 + $0x2f0] sm:$0xff]  ;;  %v1201_v29 = vsub.f32 %v689_v10, %v1073_v16  ;;  %v437_v31 = vld [vmem:[%s2602_s12 + $0x2f8] sm:$0xff]  ;;  %v1582_v33 = vmax.f32 %v2017_v20, 0.0  ;;  %v2018_v34 = vadd.f32 -0.5, %v1327_v21  ;;  %v1202_v35 = vsub.f32 %v690_v22, %v1074_v23 }
 0x12b   : > { %v948_v26 = vld [vmem:[%s2621_s7 + $0x2f0] sm:$0xff]  ;;  %v565_v32 = vld [vmem:[%s2610_s13 + $0x2f8] sm:$0xff]  ;;  %v1075_v36 = vsub.f32 %v819_v17, %v947_v18  ;;  %v438_v39 = vld [vmem:[%s2602_s12 + $0x300] sm:$0xff]  ;;  %1709 = vst [vmem:[%s2663_s25 + $0x2b8] sm:$0xff] %v1581_v27  ;;  %v2019_v40 = vadd.f32 -0.5, %v1328_v28  ;;  %v692_v42 = vsub.f32 %v436_v19, %v564_v24 }
 0x12c   : > { %v821_v37 = vld [vmem:[%s2617_s23 + $0x2f8] sm:$0xff]  ;;  %v1329_v41 = vand.u32 2147483647, %v1201_v29  ;;  %v1076_v43 = vsub.f32 %v820_v25, %v948_v26  ;;  %v566_v44 = vld [vmem:[%s2610_s13 + $0x300] sm:$0xff]  ;;  %1710 = vst [vmem:[%s2663_s25 + $0x2c0] sm:$0xff] %v1582_v33  ;;  %v1583_v47 = vmax.f32 %v2018_v34, 0.0  ;;  %v693_v50 = vsub.f32 %v437_v31, %v565_v32 }
 0x12d   : > { %v949_v38 = vld [vmem:[%s2621_s7 + $0x2f8] sm:$0xff]  ;;  %v822_v45 = vld [vmem:[%s2617_s23 + $0x300] sm:$0xff]  ;;  %v1330_v48 = vand.u32 2147483647, %v1202_v35  ;;  %v1203_v49 = vsub.f32 %v691_v30, %v1075_v36  ;;  %v439_v51 = vld [vmem:[%s2602_s12 + $0x308] sm:$0xff]  ;;  %v1584_v53 = vmax.f32 %v2019_v40, 0.0  ;;  %v694_v62 = vsub.f32 %v438_v39, %v566_v44 }
 0x12e   : > { %v950_v46 = vld [vmem:[%s2621_s7 + $0x300] sm:$0xff]  ;;  %v567_v52 = vld [vmem:[%s2610_s13 + $0x308] sm:$0xff]  ;;  %v2020_v54 = vadd.f32 -0.5, %v1329_v41  ;;  %v1204_v55 = vsub.f32 %v692_v42, %v1076_v43  ;;  %v1077_v56 = vsub.f32 %v821_v37, %v949_v38  ;;  %v440_v59 = vld [vmem:[%s2602_s12 + $0x310] sm:$0xff]  ;;  %1711 = vst [vmem:[%s2663_s25 + $0x2c8] sm:$0xff] %v1583_v47 }
 0x12f   : > { %v823_v57 = vld [vmem:[%s2617_s23 + $0x308] sm:$0xff]  ;;  %v2021_v60 = vadd.f32 -0.5, %v1330_v48  ;;  %v1331_v61 = vand.u32 2147483647, %v1203_v49  ;;  %v1078_v63 = vsub.f32 %v822_v45, %v950_v46  ;;  %v568_v0 = vld [vmem:[%s2610_s13 + $0x310] sm:$0xff]  ;;  %1712 = vst [vmem:[%s2663_s25 + $0x2d0] sm:$0xff] %v1584_v53  ;;  %v695_v6 = vsub.f32 %v439_v51, %v567_v52 }
 0x130   : > { %v951_v58 = vld [vmem:[%s2621_s7 + $0x308] sm:$0xff]  ;;  %v824_v1 = vld [vmem:[%s2617_s23 + $0x310] sm:$0xff]  ;;  %v1585_v3 = vmax.f32 %v2020_v54, 0.0  ;;  %v1332_v4 = vand.u32 2147483647, %v1204_v55  ;;  %v1205_v5 = vsub.f32 %v693_v50, %v1077_v56  ;;  %v441_v7 = vld [vmem:[%s2602_s12 + $0x318] sm:$0xff]  ;;  %v696_v18 = vsub.f32 %v440_v59, %v568_v0 }
 0x131   : > { %v952_v2 = vld [vmem:[%s2621_s7 + $0x310] sm:$0xff]  ;;  %v569_v8 = vld [vmem:[%s2610_s13 + $0x318] sm:$0xff]  ;;  %v1586_v9 = vmax.f32 %v2021_v60, 0.0  ;;  %v2022_v10 = vadd.f32 -0.5, %v1331_v61  ;;  %v1206_v11 = vsub.f32 %v694_v62, %v1078_v63  ;;  %v1079_v12 = vsub.f32 %v823_v57, %v951_v58  ;;  %v442_v15 = vld [vmem:[%s2602_s12 + $0x320] sm:$0xff] }
 0x132   : > { %v825_v13 = vld [vmem:[%s2617_s23 + $0x318] sm:$0xff]  ;;  %1713 = vst [vmem:[%s2663_s25 + $0x2d8] sm:$0xff] %v1585_v3  ;;  %v2023_v16 = vadd.f32 -0.5, %v1332_v4  ;;  %v1333_v17 = vand.u32 2147483647, %v1205_v5  ;;  %v1080_v19 = vsub.f32 %v824_v1, %v952_v2  ;;  %v570_v20 = vld [vmem:[%s2610_s13 + $0x320] sm:$0xff]  ;;  %v697_v26 = vsub.f32 %v441_v7, %v569_v8 }
 0x133   : > { %v953_v14 = vld [vmem:[%s2621_s7 + $0x318] sm:$0xff]  ;;  %v826_v21 = vld [vmem:[%s2617_s23 + $0x320] sm:$0xff]  ;;  %1714 = vst [vmem:[%s2663_s25 + $0x2e0] sm:$0xff] %v1586_v9  ;;  %v1587_v23 = vmax.f32 %v2022_v10, 0.0  ;;  %v1334_v24 = vand.u32 2147483647, %v1206_v11  ;;  %v1207_v25 = vsub.f32 %v695_v6, %v1079_v12  ;;  %v698_v38 = vsub.f32 %v442_v15, %v570_v20 }
 0x134   : > { %v954_v22 = vld [vmem:[%s2621_s7 + $0x320] sm:$0xff]  ;;  %v443_v27 = vld [vmem:[%s2602_s12 + $0x328] sm:$0xff]  ;;  %v1588_v29 = vmax.f32 %v2023_v16, 0.0  ;;  %v2024_v30 = vadd.f32 -0.5, %v1333_v17  ;;  %v1208_v31 = vsub.f32 %v696_v18, %v1080_v19  ;;  %v1081_v32 = vsub.f32 %v825_v13, %v953_v14  ;;  %v444_v35 = vld [vmem:[%s2602_s12 + $0x330] sm:$0xff] }
 0x135   : > { %v571_v28 = vld [vmem:[%s2610_s13 + $0x328] sm:$0xff]  ;;  %1715 = vst [vmem:[%s2663_s25 + $0x2e8] sm:$0xff] %v1587_v23  ;;  %v2025_v36 = vadd.f32 -0.5, %v1334_v24  ;;  %v1335_v37 = vand.u32 2147483647, %v1207_v25  ;;  %v1082_v39 = vsub.f32 %v826_v21, %v954_v22  ;;  %v572_v40 = vld [vmem:[%s2610_s13 + $0x330] sm:$0xff] }
 0x136   : > { %v827_v33 = vld [vmem:[%s2617_s23 + $0x328] sm:$0xff]  ;;  %v828_v41 = vld [vmem:[%s2617_s23 + $0x330] sm:$0xff]  ;;  %1716 = vst [vmem:[%s2663_s25 + $0x2f0] sm:$0xff] %v1588_v29  ;;  %v1589_v43 = vmax.f32 %v2024_v30, 0.0  ;;  %v1336_v44 = vand.u32 2147483647, %v1208_v31  ;;  %v1209_v45 = vsub.f32 %v697_v26, %v1081_v32  ;;  %v699_v46 = vsub.f32 %v443_v27, %v571_v28 }
 0x137   : > { %v955_v34 = vld [vmem:[%s2621_s7 + $0x328] sm:$0xff]  ;;  %v956_v42 = vld [vmem:[%s2621_s7 + $0x330] sm:$0xff]  ;;  %v445_v47 = vld [vmem:[%s2602_s12 + $0x338] sm:$0xff]  ;;  %v1590_v49 = vmax.f32 %v2025_v36, 0.0  ;;  %v2026_v50 = vadd.f32 -0.5, %v1335_v37  ;;  %v1210_v51 = vsub.f32 %v698_v38, %v1082_v39  ;;  %v700_v58 = vsub.f32 %v444_v35, %v572_v40 }
 0x138   : > { %v573_v48 = vld [vmem:[%s2610_s13 + $0x338] sm:$0xff]  ;;  %v1083_v52 = vsub.f32 %v827_v33, %v955_v34  ;;  %v446_v55 = vld [vmem:[%s2602_s12 + $0x340] sm:$0xff]  ;;  %1717 = vst [vmem:[%s2663_s25 + $0x2f8] sm:$0xff] %v1589_v43  ;;  %v2027_v56 = vadd.f32 -0.5, %v1336_v44  ;;  %v1337_v57 = vand.u32 2147483647, %v1209_v45  ;;  %v1084_v59 = vsub.f32 %v828_v41, %v956_v42 }
 0x139   : > { %v829_v53 = vld [vmem:[%s2617_s23 + $0x338] sm:$0xff]  ;;  %v574_v60 = vld [vmem:[%s2610_s13 + $0x340] sm:$0xff]  ;;  %1718 = vst [vmem:[%s2663_s25 + $0x300] sm:$0xff] %v1590_v49  ;;  %v1591_v63 = vmax.f32 %v2026_v50, 0.0  ;;  %v1338_v0 = vand.u32 2147483647, %v1210_v51  ;;  %v701_v2 = vsub.f32 %v445_v47, %v573_v48 }
 0x13a   : > { %v957_v54 = vld [vmem:[%s2621_s7 + $0x338] sm:$0xff]  ;;  %v830_v61 = vld [vmem:[%s2617_s23 + $0x340] sm:$0xff]  ;;  %v1211_v1 = vsub.f32 %v699_v46, %v1083_v52  ;;  %v447_v3 = vld [vmem:[%s2602_s12 + $0x348] sm:$0xff]  ;;  %v1592_v5 = vmax.f32 %v2027_v56, 0.0  ;;  %v2028_v6 = vadd.f32 -0.5, %v1337_v57  ;;  %v1212_v7 = vsub.f32 %v700_v58, %v1084_v59 }
 0x13b   : > { %v958_v62 = vld [vmem:[%s2621_s7 + $0x340] sm:$0xff]  ;;  %v575_v4 = vld [vmem:[%s2610_s13 + $0x348] sm:$0xff]  ;;  %v1085_v8 = vsub.f32 %v829_v53, %v957_v54  ;;  %v448_v11 = vld [vmem:[%s2602_s12 + $0x350] sm:$0xff]  ;;  %1719 = vst [vmem:[%s2663_s25 + $0x308] sm:$0xff] %v1591_v63  ;;  %v2029_v12 = vadd.f32 -0.5, %v1338_v0  ;;  %v702_v14 = vsub.f32 %v446_v55, %v574_v60 }
 0x13c   : > { %v831_v9 = vld [vmem:[%s2617_s23 + $0x348] sm:$0xff]  ;;  %v1339_v13 = vand.u32 2147483647, %v1211_v1  ;;  %v1086_v15 = vsub.f32 %v830_v61, %v958_v62  ;;  %v576_v16 = vld [vmem:[%s2610_s13 + $0x350] sm:$0xff]  ;;  %1720 = vst [vmem:[%s2663_s25 + $0x310] sm:$0xff] %v1592_v5  ;;  %v1593_v19 = vmax.f32 %v2028_v6, 0.0  ;;  %v703_v22 = vsub.f32 %v447_v3, %v575_v4 }
 0x13d   : > { %v959_v10 = vld [vmem:[%s2621_s7 + $0x348] sm:$0xff]  ;;  %v832_v17 = vld [vmem:[%s2617_s23 + $0x350] sm:$0xff]  ;;  %v1340_v20 = vand.u32 2147483647, %v1212_v7  ;;  %v1213_v21 = vsub.f32 %v701_v2, %v1085_v8  ;;  %v449_v23 = vld [vmem:[%s2602_s12 + $0x358] sm:$0xff]  ;;  %v1594_v25 = vmax.f32 %v2029_v12, 0.0  ;;  %v704_v34 = vsub.f32 %v448_v11, %v576_v16 }
 0x13e   : > { %v960_v18 = vld [vmem:[%s2621_s7 + $0x350] sm:$0xff]  ;;  %v577_v24 = vld [vmem:[%s2610_s13 + $0x358] sm:$0xff]  ;;  %v2030_v26 = vadd.f32 -0.5, %v1339_v13  ;;  %v1214_v27 = vsub.f32 %v702_v14, %v1086_v15  ;;  %v1087_v28 = vsub.f32 %v831_v9, %v959_v10  ;;  %v450_v31 = vld [vmem:[%s2602_s12 + $0x360] sm:$0xff]  ;;  %1721 = vst [vmem:[%s2663_s25 + $0x318] sm:$0xff] %v1593_v19 }
 0x13f   : > { %v833_v29 = vld [vmem:[%s2617_s23 + $0x358] sm:$0xff]  ;;  %v2031_v32 = vadd.f32 -0.5, %v1340_v20  ;;  %v1341_v33 = vand.u32 2147483647, %v1213_v21  ;;  %v1088_v35 = vsub.f32 %v832_v17, %v960_v18  ;;  %v578_v36 = vld [vmem:[%s2610_s13 + $0x360] sm:$0xff]  ;;  %1722 = vst [vmem:[%s2663_s25 + $0x320] sm:$0xff] %v1594_v25  ;;  %v705_v42 = vsub.f32 %v449_v23, %v577_v24 }
 0x140   : > { %v961_v30 = vld [vmem:[%s2621_s7 + $0x358] sm:$0xff]  ;;  %v834_v37 = vld [vmem:[%s2617_s23 + $0x360] sm:$0xff]  ;;  %v1595_v39 = vmax.f32 %v2030_v26, 0.0  ;;  %v1342_v40 = vand.u32 2147483647, %v1214_v27  ;;  %v1215_v41 = vsub.f32 %v703_v22, %v1087_v28  ;;  %v451_v43 = vld [vmem:[%s2602_s12 + $0x368] sm:$0xff]  ;;  %v706_v54 = vsub.f32 %v450_v31, %v578_v36 }
 0x141   : > { %v962_v38 = vld [vmem:[%s2621_s7 + $0x360] sm:$0xff]  ;;  %v579_v44 = vld [vmem:[%s2610_s13 + $0x368] sm:$0xff]  ;;  %v1596_v45 = vmax.f32 %v2031_v32, 0.0  ;;  %v2032_v46 = vadd.f32 -0.5, %v1341_v33  ;;  %v1216_v47 = vsub.f32 %v704_v34, %v1088_v35  ;;  %v1089_v48 = vsub.f32 %v833_v29, %v961_v30  ;;  %v452_v51 = vld [vmem:[%s2602_s12 + $0x370] sm:$0xff] }
 0x142   : > { %v835_v49 = vld [vmem:[%s2617_s23 + $0x368] sm:$0xff]  ;;  %1723 = vst [vmem:[%s2663_s25 + $0x328] sm:$0xff] %v1595_v39  ;;  %v2033_v52 = vadd.f32 -0.5, %v1342_v40  ;;  %v1343_v53 = vand.u32 2147483647, %v1215_v41  ;;  %v1090_v55 = vsub.f32 %v834_v37, %v962_v38  ;;  %v580_v56 = vld [vmem:[%s2610_s13 + $0x370] sm:$0xff]  ;;  %v707_v62 = vsub.f32 %v451_v43, %v579_v44 }
 0x143   : > { %v963_v50 = vld [vmem:[%s2621_s7 + $0x368] sm:$0xff]  ;;  %v836_v57 = vld [vmem:[%s2617_s23 + $0x370] sm:$0xff]  ;;  %1724 = vst [vmem:[%s2663_s25 + $0x330] sm:$0xff] %v1596_v45  ;;  %v1597_v59 = vmax.f32 %v2032_v46, 0.0  ;;  %v1344_v60 = vand.u32 2147483647, %v1216_v47  ;;  %v1217_v61 = vsub.f32 %v705_v42, %v1089_v48  ;;  %v708_v10 = vsub.f32 %v452_v51, %v580_v56 }
 0x144   : > { %v964_v58 = vld [vmem:[%s2621_s7 + $0x370] sm:$0xff]  ;;  %v453_v63 = vld [vmem:[%s2602_s12 + $0x378] sm:$0xff]  ;;  %v1598_v1 = vmax.f32 %v2033_v52, 0.0  ;;  %v2034_v2 = vadd.f32 -0.5, %v1343_v53  ;;  %v1218_v3 = vsub.f32 %v706_v54, %v1090_v55  ;;  %v1091_v4 = vsub.f32 %v835_v49, %v963_v50  ;;  %v454_v7 = vld [vmem:[%s2602_s12 + $0x380] sm:$0xff] }
 0x145   : > { %v581_v0 = vld [vmem:[%s2610_s13 + $0x378] sm:$0xff]  ;;  %1725 = vst [vmem:[%s2663_s25 + $0x338] sm:$0xff] %v1597_v59  ;;  %v2035_v8 = vadd.f32 -0.5, %v1344_v60  ;;  %v1345_v9 = vand.u32 2147483647, %v1217_v61  ;;  %v1092_v11 = vsub.f32 %v836_v57, %v964_v58  ;;  %v582_v12 = vld [vmem:[%s2610_s13 + $0x380] sm:$0xff] }
 0x146   : > { %v837_v5 = vld [vmem:[%s2617_s23 + $0x378] sm:$0xff]  ;;  %v838_v13 = vld [vmem:[%s2617_s23 + $0x380] sm:$0xff]  ;;  %1726 = vst [vmem:[%s2663_s25 + $0x340] sm:$0xff] %v1598_v1  ;;  %v1599_v15 = vmax.f32 %v2034_v2, 0.0  ;;  %v1346_v16 = vand.u32 2147483647, %v1218_v3  ;;  %v1219_v17 = vsub.f32 %v707_v62, %v1091_v4  ;;  %v709_v18 = vsub.f32 %v453_v63, %v581_v0 }
 0x147   : > { %v965_v6 = vld [vmem:[%s2621_s7 + $0x378] sm:$0xff]  ;;  %v966_v14 = vld [vmem:[%s2621_s7 + $0x380] sm:$0xff]  ;;  %v455_v19 = vld [vmem:[%s2602_s12 + $0x388] sm:$0xff]  ;;  %v1600_v21 = vmax.f32 %v2035_v8, 0.0  ;;  %v2036_v22 = vadd.f32 -0.5, %v1345_v9  ;;  %v1220_v23 = vsub.f32 %v708_v10, %v1092_v11  ;;  %v710_v30 = vsub.f32 %v454_v7, %v582_v12 }
 0x148   : > { %v583_v20 = vld [vmem:[%s2610_s13 + $0x388] sm:$0xff]  ;;  %v1093_v24 = vsub.f32 %v837_v5, %v965_v6  ;;  %v456_v27 = vld [vmem:[%s2602_s12 + $0x390] sm:$0xff]  ;;  %1727 = vst [vmem:[%s2663_s25 + $0x348] sm:$0xff] %v1599_v15  ;;  %v2037_v28 = vadd.f32 -0.5, %v1346_v16  ;;  %v1347_v29 = vand.u32 2147483647, %v1219_v17  ;;  %v1094_v31 = vsub.f32 %v838_v13, %v966_v14 }
 0x149   : > { %v839_v25 = vld [vmem:[%s2617_s23 + $0x388] sm:$0xff]  ;;  %v584_v32 = vld [vmem:[%s2610_s13 + $0x390] sm:$0xff]  ;;  %1728 = vst [vmem:[%s2663_s25 + $0x350] sm:$0xff] %v1600_v21  ;;  %v1601_v35 = vmax.f32 %v2036_v22, 0.0  ;;  %v1348_v36 = vand.u32 2147483647, %v1220_v23  ;;  %v711_v38 = vsub.f32 %v455_v19, %v583_v20 }
 0x14a   : > { %v967_v26 = vld [vmem:[%s2621_s7 + $0x388] sm:$0xff]  ;;  %v840_v33 = vld [vmem:[%s2617_s23 + $0x390] sm:$0xff]  ;;  %v1221_v37 = vsub.f32 %v709_v18, %v1093_v24  ;;  %v457_v39 = vld [vmem:[%s2602_s12 + $0x398] sm:$0xff]  ;;  %v1602_v41 = vmax.f32 %v2037_v28, 0.0  ;;  %v2038_v42 = vadd.f32 -0.5, %v1347_v29  ;;  %v1222_v43 = vsub.f32 %v710_v30, %v1094_v31 }
 0x14b   : > { %v968_v34 = vld [vmem:[%s2621_s7 + $0x390] sm:$0xff]  ;;  %v585_v40 = vld [vmem:[%s2610_s13 + $0x398] sm:$0xff]  ;;  %v1095_v44 = vsub.f32 %v839_v25, %v967_v26  ;;  %v458_v47 = vld [vmem:[%s2602_s12 + $0x3a0] sm:$0xff]  ;;  %1729 = vst [vmem:[%s2663_s25 + $0x358] sm:$0xff] %v1601_v35  ;;  %v2039_v48 = vadd.f32 -0.5, %v1348_v36  ;;  %v712_v50 = vsub.f32 %v456_v27, %v584_v32 }
 0x14c   : > { %v841_v45 = vld [vmem:[%s2617_s23 + $0x398] sm:$0xff]  ;;  %v1349_v49 = vand.u32 2147483647, %v1221_v37  ;;  %v1096_v51 = vsub.f32 %v840_v33, %v968_v34  ;;  %v586_v52 = vld [vmem:[%s2610_s13 + $0x3a0] sm:$0xff]  ;;  %1730 = vst [vmem:[%s2663_s25 + $0x360] sm:$0xff] %v1602_v41  ;;  %v1603_v55 = vmax.f32 %v2038_v42, 0.0  ;;  %v713_v58 = vsub.f32 %v457_v39, %v585_v40 }
 0x14d   : > { %v969_v46 = vld [vmem:[%s2621_s7 + $0x398] sm:$0xff]  ;;  %v842_v53 = vld [vmem:[%s2617_s23 + $0x3a0] sm:$0xff]  ;;  %v1350_v56 = vand.u32 2147483647, %v1222_v43  ;;  %v1223_v57 = vsub.f32 %v711_v38, %v1095_v44  ;;  %v459_v59 = vld [vmem:[%s2602_s12 + $0x3a8] sm:$0xff]  ;;  %v1604_v61 = vmax.f32 %v2039_v48, 0.0  ;;  %v714_v6 = vsub.f32 %v458_v47, %v586_v52 }
 0x14e   : > { %v970_v54 = vld [vmem:[%s2621_s7 + $0x3a0] sm:$0xff]  ;;  %v587_v60 = vld [vmem:[%s2610_s13 + $0x3a8] sm:$0xff]  ;;  %v2040_v62 = vadd.f32 -0.5, %v1349_v49  ;;  %v1224_v63 = vsub.f32 %v712_v50, %v1096_v51  ;;  %v1097_v0 = vsub.f32 %v841_v45, %v969_v46  ;;  %v460_v3 = vld [vmem:[%s2602_s12 + $0x3b0] sm:$0xff]  ;;  %1731 = vst [vmem:[%s2663_s25 + $0x368] sm:$0xff] %v1603_v55 }
 0x14f   : > { %v843_v1 = vld [vmem:[%s2617_s23 + $0x3a8] sm:$0xff]  ;;  %v2041_v4 = vadd.f32 -0.5, %v1350_v56  ;;  %v1351_v5 = vand.u32 2147483647, %v1223_v57  ;;  %v1098_v7 = vsub.f32 %v842_v53, %v970_v54  ;;  %v588_v8 = vld [vmem:[%s2610_s13 + $0x3b0] sm:$0xff]  ;;  %1732 = vst [vmem:[%s2663_s25 + $0x370] sm:$0xff] %v1604_v61  ;;  %v715_v14 = vsub.f32 %v459_v59, %v587_v60 }
 0x150   : > { %v971_v2 = vld [vmem:[%s2621_s7 + $0x3a8] sm:$0xff]  ;;  %v844_v9 = vld [vmem:[%s2617_s23 + $0x3b0] sm:$0xff]  ;;  %v1605_v11 = vmax.f32 %v2040_v62, 0.0  ;;  %v1352_v12 = vand.u32 2147483647, %v1224_v63  ;;  %v1225_v13 = vsub.f32 %v713_v58, %v1097_v0  ;;  %v461_v15 = vld [vmem:[%s2602_s12 + $0x3b8] sm:$0xff]  ;;  %v716_v26 = vsub.f32 %v460_v3, %v588_v8 }
 0x151   : > { %v972_v10 = vld [vmem:[%s2621_s7 + $0x3b0] sm:$0xff]  ;;  %v589_v16 = vld [vmem:[%s2610_s13 + $0x3b8] sm:$0xff]  ;;  %v1606_v17 = vmax.f32 %v2041_v4, 0.0  ;;  %v2042_v18 = vadd.f32 -0.5, %v1351_v5  ;;  %v1226_v19 = vsub.f32 %v714_v6, %v1098_v7  ;;  %v1099_v20 = vsub.f32 %v843_v1, %v971_v2  ;;  %v462_v23 = vld [vmem:[%s2602_s12 + $0x3c0] sm:$0xff] }
 0x152   : > { %v845_v21 = vld [vmem:[%s2617_s23 + $0x3b8] sm:$0xff]  ;;  %1733 = vst [vmem:[%s2663_s25 + $0x378] sm:$0xff] %v1605_v11  ;;  %v2043_v24 = vadd.f32 -0.5, %v1352_v12  ;;  %v1353_v25 = vand.u32 2147483647, %v1225_v13  ;;  %v1100_v27 = vsub.f32 %v844_v9, %v972_v10  ;;  %v590_v28 = vld [vmem:[%s2610_s13 + $0x3c0] sm:$0xff]  ;;  %v717_v34 = vsub.f32 %v461_v15, %v589_v16 }
 0x153   : > { %v973_v22 = vld [vmem:[%s2621_s7 + $0x3b8] sm:$0xff]  ;;  %v846_v29 = vld [vmem:[%s2617_s23 + $0x3c0] sm:$0xff]  ;;  %1734 = vst [vmem:[%s2663_s25 + $0x380] sm:$0xff] %v1606_v17  ;;  %v1607_v31 = vmax.f32 %v2042_v18, 0.0  ;;  %v1354_v32 = vand.u32 2147483647, %v1226_v19  ;;  %v1227_v33 = vsub.f32 %v715_v14, %v1099_v20  ;;  %v718_v46 = vsub.f32 %v462_v23, %v590_v28 }
 0x154   : > { %v974_v30 = vld [vmem:[%s2621_s7 + $0x3c0] sm:$0xff]  ;;  %v463_v35 = vld [vmem:[%s2602_s12 + $0x3c8] sm:$0xff]  ;;  %v1608_v37 = vmax.f32 %v2043_v24, 0.0  ;;  %v2044_v38 = vadd.f32 -0.5, %v1353_v25  ;;  %v1228_v39 = vsub.f32 %v716_v26, %v1100_v27  ;;  %v1101_v40 = vsub.f32 %v845_v21, %v973_v22  ;;  %v464_v43 = vld [vmem:[%s2602_s12 + $0x3d0] sm:$0xff] }
 0x155   : > { %v591_v36 = vld [vmem:[%s2610_s13 + $0x3c8] sm:$0xff]  ;;  %1735 = vst [vmem:[%s2663_s25 + $0x388] sm:$0xff] %v1607_v31  ;;  %v2045_v44 = vadd.f32 -0.5, %v1354_v32  ;;  %v1355_v45 = vand.u32 2147483647, %v1227_v33  ;;  %v1102_v47 = vsub.f32 %v846_v29, %v974_v30  ;;  %v592_v48 = vld [vmem:[%s2610_s13 + $0x3d0] sm:$0xff] }
 0x156   : > { %v847_v41 = vld [vmem:[%s2617_s23 + $0x3c8] sm:$0xff]  ;;  %v848_v49 = vld [vmem:[%s2617_s23 + $0x3d0] sm:$0xff]  ;;  %1736 = vst [vmem:[%s2663_s25 + $0x390] sm:$0xff] %v1608_v37  ;;  %v1609_v51 = vmax.f32 %v2044_v38, 0.0  ;;  %v1356_v52 = vand.u32 2147483647, %v1228_v39  ;;  %v1229_v53 = vsub.f32 %v717_v34, %v1101_v40  ;;  %v719_v54 = vsub.f32 %v463_v35, %v591_v36 }
 0x157   : > { %v975_v42 = vld [vmem:[%s2621_s7 + $0x3c8] sm:$0xff]  ;;  %v976_v50 = vld [vmem:[%s2621_s7 + $0x3d0] sm:$0xff]  ;;  %v465_v55 = vld [vmem:[%s2602_s12 + $0x3d8] sm:$0xff]  ;;  %v1610_v57 = vmax.f32 %v2045_v44, 0.0  ;;  %v2046_v58 = vadd.f32 -0.5, %v1355_v45  ;;  %v1230_v59 = vsub.f32 %v718_v46, %v1102_v47  ;;  %v720_v2 = vsub.f32 %v464_v43, %v592_v48 }
 0x158   : > { %v593_v56 = vld [vmem:[%s2610_s13 + $0x3d8] sm:$0xff]  ;;  %v1103_v60 = vsub.f32 %v847_v41, %v975_v42  ;;  %v466_v63 = vld [vmem:[%s2602_s12 + $0x3e0] sm:$0xff]  ;;  %1737 = vst [vmem:[%s2663_s25 + $0x398] sm:$0xff] %v1609_v51  ;;  %v2047_v0 = vadd.f32 -0.5, %v1356_v52  ;;  %v1357_v1 = vand.u32 2147483647, %v1229_v53  ;;  %v1104_v3 = vsub.f32 %v848_v49, %v976_v50 }
 0x159   : > { %v849_v61 = vld [vmem:[%s2617_s23 + $0x3d8] sm:$0xff]  ;;  %v594_v4 = vld [vmem:[%s2610_s13 + $0x3e0] sm:$0xff]  ;;  %1738 = vst [vmem:[%s2663_s25 + $0x3a0] sm:$0xff] %v1610_v57  ;;  %v1611_v7 = vmax.f32 %v2046_v58, 0.0  ;;  %v1358_v8 = vand.u32 2147483647, %v1230_v59  ;;  %v721_v10 = vsub.f32 %v465_v55, %v593_v56 }
 0x15a   : > { %v977_v62 = vld [vmem:[%s2621_s7 + $0x3d8] sm:$0xff]  ;;  %v850_v5 = vld [vmem:[%s2617_s23 + $0x3e0] sm:$0xff]  ;;  %v1231_v9 = vsub.f32 %v719_v54, %v1103_v60  ;;  %v467_v11 = vld [vmem:[%s2602_s12 + $0x3e8] sm:$0xff]  ;;  %v1612_v13 = vmax.f32 %v2047_v0, 0.0  ;;  %v2048_v14 = vadd.f32 -0.5, %v1357_v1  ;;  %v1232_v15 = vsub.f32 %v720_v2, %v1104_v3 }
 0x15b   : > { %v978_v6 = vld [vmem:[%s2621_s7 + $0x3e0] sm:$0xff]  ;;  %v595_v12 = vld [vmem:[%s2610_s13 + $0x3e8] sm:$0xff]  ;;  %v1105_v16 = vsub.f32 %v849_v61, %v977_v62  ;;  %v468_v19 = vld [vmem:[%s2602_s12 + $0x3f0] sm:$0xff]  ;;  %1739 = vst [vmem:[%s2663_s25 + $0x3a8] sm:$0xff] %v1611_v7  ;;  %v2049_v20 = vadd.f32 -0.5, %v1358_v8  ;;  %v722_v22 = vsub.f32 %v466_v63, %v594_v4 }
 0x15c   : > { %v851_v17 = vld [vmem:[%s2617_s23 + $0x3e8] sm:$0xff]  ;;  %v1359_v21 = vand.u32 2147483647, %v1231_v9  ;;  %v1106_v23 = vsub.f32 %v850_v5, %v978_v6  ;;  %v596_v24 = vld [vmem:[%s2610_s13 + $0x3f0] sm:$0xff]  ;;  %1740 = vst [vmem:[%s2663_s25 + $0x3b0] sm:$0xff] %v1612_v13  ;;  %v1613_v27 = vmax.f32 %v2048_v14, 0.0  ;;  %v723_v30 = vsub.f32 %v467_v11, %v595_v12 }
 0x15d   : > { %v979_v18 = vld [vmem:[%s2621_s7 + $0x3e8] sm:$0xff]  ;;  %v852_v25 = vld [vmem:[%s2617_s23 + $0x3f0] sm:$0xff]  ;;  %v1360_v28 = vand.u32 2147483647, %v1232_v15  ;;  %v1233_v29 = vsub.f32 %v721_v10, %v1105_v16  ;;  %v469_v31 = vld [vmem:[%s2602_s12 + $0x3f8] sm:$0xff]  ;;  %v1614_v33 = vmax.f32 %v2049_v20, 0.0  ;;  %v724_v41 = vsub.f32 %v468_v19, %v596_v24 }
 0x15e   : > { %v980_v26 = vld [vmem:[%s2621_s7 + $0x3f0] sm:$0xff]  ;;  %v597_v32 = vld [vmem:[%s2610_s13 + $0x3f8] sm:$0xff]  ;;  %v2050_v34 = vadd.f32 -0.5, %v1359_v21  ;;  %v1234_v35 = vsub.f32 %v722_v22, %v1106_v23  ;;  %v1107_v36 = vsub.f32 %v851_v17, %v979_v18  ;;  %1741 = vst [vmem:[%s2663_s25 + $0x3b8] sm:$0xff] %v1613_v27 }
 0x15f   : > { %v853_v37 = vld [vmem:[%s2617_s23 + $0x3f8] sm:$0xff]  ;;  %v2051_v39 = vadd.f32 -0.5, %v1360_v28  ;;  %v1361_v40 = vand.u32 2147483647, %v1233_v29  ;;  %v1108_v42 = vsub.f32 %v852_v25, %v980_v26  ;;  %1742 = vst [vmem:[%s2663_s25 + $0x3c0] sm:$0xff] %v1614_v33  ;;  %v725_v46 = vsub.f32 %v469_v31, %v597_v32 }
 0x160   : > { %v981_v38 = vld [vmem:[%s2621_s7 + $0x3f8] sm:$0xff]  ;;  %v1615_v43 = vmax.f32 %v2050_v34, 0.0  ;;  %v1362_v44 = vand.u32 2147483647, %v1234_v35  ;;  %v1235_v45 = vsub.f32 %v723_v30, %v1107_v36 }
 0x161   : > { %v1616_v47 = vmax.f32 %v2051_v39, 0.0  ;;  %v2052_v48 = vadd.f32 -0.5, %v1361_v40  ;;  %v1236_v49 = vsub.f32 %v724_v41, %v1108_v42  ;;  %v1109_v50 = vsub.f32 %v853_v37, %v981_v38 }
 0x162   : > { %1743 = vst [vmem:[%s2663_s25 + $0x3c8] sm:$0xff] %v1615_v43  ;;  %v2053_v51 = vadd.f32 -0.5, %v1362_v44  ;;  %v1363_v52 = vand.u32 2147483647, %v1235_v45 }
 0x163   : > { %1744 = vst [vmem:[%s2663_s25 + $0x3d0] sm:$0xff] %v1616_v47  ;;  %v1617_v53 = vmax.f32 %v2052_v48, 0.0  ;;  %v1364_v54 = vand.u32 2147483647, %v1236_v49  ;;  %v1237_v55 = vsub.f32 %v725_v46, %v1109_v50 }
 0x164   : > { %v1618_v56 = vmax.f32 %v2053_v51, 0.0  ;;  %v2054_v57 = vadd.f32 -0.5, %v1363_v52 }
 0x165   : > { %1745 = vst [vmem:[%s2663_s25 + $0x3d8] sm:$0xff] %v1617_v53  ;;  %v2055_v58 = vadd.f32 -0.5, %v1364_v54  ;;  %v1365_v59 = vand.u32 2147483647, %v1237_v55 }
 0x166   : > { %1746 = vst [vmem:[%s2663_s25 + $0x3e0] sm:$0xff] %v1618_v56  ;;  %v1619_v60 = vmax.f32 %v2054_v57, 0.0 }
 0x167   : > { %v1620_v61 = vmax.f32 %v2055_v58, 0.0  ;;  %v2056_v62 = vadd.f32 -0.5, %v1365_v59 }
 0x168   : > { %1747 = vst [vmem:[%s2663_s25 + $0x3e8] sm:$0xff] %v1619_v60 }
 0x169   : > { %1748 = vst [vmem:[%s2663_s25 + $0x3f0] sm:$0xff] %v1620_v61  ;;  %v1621_v63 = vmax.f32 %v2056_v62, 0.0 }
 0x16b   : > { %1749 = vst [vmem:[%s2663_s25 + $0x3f8] sm:$0xff] %v1621_v63 }
 0x16c   : > { %2271 = shalt.err (!%p2268_p5)
}
 0x16d   : > { %s2272_s8 = scalar_lea.hbm %s3273_s6, 16384  ;;  %s2276_s28 = scalar_lea.hbm %s3325_s4, 32768 }
 0x16e   : > { %p2273_p1 = scmp.ne.s32.totalorder %s3273_s6, %s2272_s8  ;;  %p2277_p12 = scmp.lt.u32.totalorder %s3273_s6, %s3325_s4 }
 0x16f   : > { %p2278_p2 = scmp.lt.u32.totalorder %s2276_s28, %s2272_s8  ;;  %p2280_p13 = scmp.lt.u32.totalorder %s2272_s8, %s3273_s6 }
 0x170   : > { %p2274_p7 = pnand %p2273_p1, %p3348_p0 }
 0x171   : > { %p2279_p6 = por %p2278_p2, %p2277_p12 }
 0x172   : > { %p2275_p9 = pneg %p2274_p7 }
 0x173   : > { %p2281_p8 = por %p2280_p13, %p2279_p6 }
 0x175   : > { %p2282_p10 = pnand %p2281_p8, %p2275_p9 }
 0x177   : > { %2285 = shalt.err (!%p2282_p10)
}
 0x178   : > { %s2341_s23 = smov 2048   ;;  %s2342_s9 = smov 128  }
 0x179   : > { %2081 = dma.vmem_to_hbm [thread:$0]  (%p3348_p0), %s3275_s20, 16384, %s3273_s6, %s1751_s19, %s2341_s23, %s2341_s23, %s2342_s9  }
 0x17a PF: > { %s1780_s7 = sand.u32 1, %s2320_s15   ;;  %p3349_p11 = scmp.ne.s32.totalorder %s3337_s27, 0 }
 0x17b   : > { %p3350_p4 = scmp.ge.s32.totalorder %s2332_s18, 2  ;;  %s1781_s25 = scalar_lea.sflag [#allocation4], %s1780_s7 }
 0x17d   : > { %p2097_p3 = pnand %p3350_p4, %p3349_p11 }
 0x17f   : > { %2315 = dma.done.wait (!%p2097_p3), %s1781_s25, 16384  }
 0x180   : > { %2317 = vsyncadd (!%p2097_p3), %s1781_s25, 4294950912  ;;  %s3351_s24 = sld [smem:[#allocation15_spill]]  ;;  %p23_p5 = scmp.ge.s32.totalorder %s2393_s21, 4  }
 0x181   : > { %s3352_s15 = smov %s2324_s16  ;;  %s3353_s16 = smov %s2328_s17 }
 0x182   : > { %s3355_s18 = smov %s2393_s21  ;;  %25 = sbr.rel (!%p23_p5) target bundleno = 12 (0xc), region = 118 }
 0x186   : > { %s3354_s17 = smov %s3351_s24 }
 0x189   :  { %1786 = vsyncpa [#allocation3], 1 }
 0x18a   :  { %1788 = vsyncpa [#allocation3 + $0x1], 1 }
 0x18b   :  { %1789 = vsyncpa [#allocation6], 1 }
 0x18c   :  { %1791 = vsyncpa [#allocation6 + $0x1], 1 }
 0x18d   :  { %1792 = vsyncpa [#allocation9], 1 }
 0x18e   :  { %1794 = vsyncpa [#allocation9 + $0x1], 1 }
 0x18f   :  { %1795 = vsyncpa [#allocation4], 1 }
 0x190   :  { %1797 = vsyncpa [#allocation4 + $0x1], 1 }

</bundles_post_ra>
